<compile_context>
chip_gen: v7x
topology: tpu7x:2x2x1
jax: 0.10.0
libtpu: 0.0.40
codegen_flags: <defaults>
</compile_context>

<pallas_src>
import functools

import jax
import jax.numpy as jnp
from jax import lax
from jax.experimental import pallas as pl
from jax.experimental.pallas import tpu as pltpu


def _conv3x3_relu(inp, w_mat, b_col):
    """3x3 VALID conv + bias + ReLU as one batched MXU contraction.

    inp   : (nb, h_in, cin, w_in), mxu dtype, channels on sublanes, W on lanes
    w_mat : (cout, 9*cin), mxu dtype, column index = (kh*3 + kw)*cin + ci
    b_col : (cout, 1) f32
    returns (nb, h_out, cout, w_out) f32
    """
    nb, h_in, cin, w_in = inp.shape
    cout = w_mat.shape[0]
    h_out, w_out = h_in - 2, w_in - 2

    # Hoisted kw lane-shifts: 3 slices of the whole block (not per output row).
    xk = [inp[..., kw:kw + w_out] for kw in range(3)]        # (nb, h_in, cin, w_out)
    # im2col: 9 shifted slabs concatenated ONCE along the channel (sublane)
    # axis; the kh shift is a leading-dim slice (free).
    patch = jnp.concatenate(
        [xk[kw][:, kh:kh + h_out] for kh in range(3) for kw in range(3)],
        axis=2)                                              # (nb, h_out, 9*cin, w_out)
    patch = patch.reshape(nb * h_out, 9 * cin, w_out)        # leading-dim reshape (free)

    # Single batched MXU matmul, f32 accumulation.
    w_b = jnp.broadcast_to(w_mat, (nb * h_out, cout, 9 * cin))
    out = jnp.einsum('bok,bkw->bow', w_b, patch,
                     preferred_element_type=jnp.float32)     # (nb*h_out, cout, w_out)
    out = out.reshape(nb, h_out, cout, w_out)                # leading-dim reshape (free)
    # Bias + ReLU in f32 on the VPU.
    return jnp.maximum(out + b_col, 0.0)


def _unet_down_kernel(x_ref, w1_ref, b1_ref, w2_ref, b2_ref, sel_ref,
                      pool_ref, rest_ref, *, mxu_dtype):
    # x_ref   : (nb, H,  Cin,  W)   one batch block, channels-on-sublane, mxu dtype
    # w*_ref  : (Cout, 9*Cin/Cout)  flattened conv weights, mxu dtype
    # b*_ref  : (Cout, 1) f32
    # sel_ref : (W2-1, Wp) f32      0/1 even-column selection matrix (hoisted)
    # pool_ref: (nb, Hp, Cout, Wp)  pooled output (f32)
    # rest_ref: (nb, H2, Cout, W2)  pre-pool output (f32)
    h1 = _conv3x3_relu(x_ref[...], w1_ref[...], b1_ref[...])            # (nb, H-2, Cout, W-2)
    h2 = _conv3x3_relu(h1.astype(mxu_dtype), w2_ref[...], b2_ref[...])  # (nb, H-4, Cout, W-4)
    rest_ref[...] = h2                                                  # single full-tile store

    nb, H2, cout, W2 = h2.shape
    Hp, Wp = H2 // 2, W2 // 2

    # --- fused 2x2, stride-2 max pool (floor mode) ---
    # H direction: leading-dim reshape (free) + one pairwise max.
    h_pairs = h2[:, :2 * Hp].reshape(nb, Hp, 2, cout, W2)
    h_rows = jnp.maximum(h_pairs[:, :, 0], h_pairs[:, :, 1])            # (nb, Hp, cout, W2)
    # W direction: one adjacent-pair max (unit-stride lane slices) ...
    wpair = jnp.maximum(h_rows[..., :W2 - 1], h_rows[..., 1:])          # (nb, Hp, cout, W2-1)
    # ... then keep every even column via ONE batched 0/1 selection matmul
    # (Mosaic has no strided value slice along the lane dim).
    wp3 = wpair.reshape(nb * Hp, cout, W2 - 1)                          # leading reshape (free)
    sel_b = jnp.broadcast_to(sel_ref[...], (nb * Hp, W2 - 1, Wp))
    pooled = jnp.einsum('bcw,bwp->bcp', wp3, sel_b,
                        preferred_element_type=jnp.float32)             # (nb*Hp, cout, Wp)
    pool_ref[...] = pooled.reshape(nb, Hp, cout, Wp)


def unet_down_block(x_nchw, w1, b1, w2, b2, *,
                    batch_block=1, mxu_dtype=jnp.float32,
                    vmem_limit_bytes=None):
    """Two 3x3 VALID convs + ReLU, then 2x2/2 max pool (UNet down block).

    Args:
      x_nchw: (N, Cin, H, W) float32 (PyTorch NCHW convention).
      w1: (Cout, Cin, 3, 3), b1: (Cout,)   conv1 params (OIHW, like nn.Conv2d)
      w2: (Cout, Cout, 3, 3), b2: (Cout,)  conv2 params
      batch_block: batch elements per grid step (keep grid extent >= 2 on v7x).
      mxu_dtype: dtype fed to the MXU (jnp.float32 or jnp.bfloat16; bf16 is the
        native fast path on v6e/v7x). Accumulation is always f32.
      vmem_limit_bytes: scoped VMEM limit. Default 48 MiB is v7x-safe; raise
        toward ~100 MiB on v5e/v6e when using large batch_block / H tiles.
    Returns:
      (pooled, up_pass_rest) both NCHW f32, matching the PyTorch module.
    """
    N, Cin, H, W = x_nchw.shape
    Cout = w1.shape[0]
    H1, W1 = H - 2, W - 2
    H2, W2 = H1 - 2, W1 - 2
    Hp, Wp = H2 // 2, W2 // 2
    assert N % batch_block == 0, "batch must be divisible by batch_block"
    nb = batch_block

    # Layout / dtype plumbing done ONCE outside the kernel:
    #   NCHW -> (N, H, C, W); OIHW -> (Cout, 9*Cin) with column (kh*3+kw)*Cin+ci;
    #   everything that feeds the MXU is pre-cast to mxu_dtype.
    x_nhcw = jnp.transpose(x_nchw, (0, 2, 1, 3)).astype(mxu_dtype)
    w1m = jnp.transpose(w1, (0, 2, 3, 1)).reshape(Cout, 9 * Cin).astype(mxu_dtype)
    w2m = jnp.transpose(w2, (0, 2, 3, 1)).reshape(Cout, 9 * Cout).astype(mxu_dtype)
    b1c = b1.reshape(Cout, 1).astype(jnp.float32)
    b2c = b2.reshape(Cout, 1).astype(jnp.float32)
    # 0/1 even-column selection matrix for the pool, hoisted out of the kernel.
    sel = (jnp.arange(W2 - 1)[:, None] == 2 * jnp.arange(Wp)[None, :]
           ).astype(jnp.float32)                                        # (W2-1, Wp)

    elt = jnp.dtype(mxu_dtype).itemsize
    flops = (2 * N * 9 * (H1 * W1 * Cin * Cout + H2 * W2 * Cout * Cout)
             + 2 * N * Hp * Cout * (W2 - 1) * Wp)
    bytes_accessed = (elt * (N * H * Cin * W + 9 * Cin * Cout + 9 * Cout * Cout)
                      + 4 * (2 * Cout + (W2 - 1) * Wp
                             + N * Hp * Cout * Wp + N * H2 * Cout * W2))

    if vmem_limit_bytes is None:
        vmem_limit_bytes = 48 * 1024 * 1024   # v7x-safe default (64 MiB physical)

    kernel = functools.partial(_unet_down_kernel, mxu_dtype=mxu_dtype)

    pool_nhcw, rest_nhcw = pl.pallas_call(
        kernel,
        grid=(N // nb,),
        in_specs=[
            pl.BlockSpec((nb, H, Cin, W), lambda n: (n, 0, 0, 0)),
            pl.BlockSpec((Cout, 9 * Cin), lambda n: (0, 0)),   # constant block:
            pl.BlockSpec((Cout, 1), lambda n: (0, 0)),         # weights / biases /
            pl.BlockSpec((Cout, 9 * Cout), lambda n: (0, 0)),  # sel are fetched once
            pl.BlockSpec((Cout, 1), lambda n: (0, 0)),
            pl.BlockSpec((W2 - 1, Wp), lambda n: (0, 0)),
        ],
        out_specs=(
            pl.BlockSpec((nb, Hp, Cout, Wp), lambda n: (n, 0, 0, 0)),
            pl.BlockSpec((nb, H2, Cout, W2), lambda n: (n, 0, 0, 0)),
        ),
        out_shape=(
            jax.ShapeDtypeStruct((N, Hp, Cout, Wp), jnp.float32),
            jax.ShapeDtypeStruct((N, H2, Cout, W2), jnp.float32),
        ),
        compiler_params=pltpu.CompilerParams(
            dimension_semantics=("parallel",),
            vmem_limit_bytes=vmem_limit_bytes,
        ),
        cost_estimate=pl.CostEstimate(
            flops=flops, transcendentals=0, bytes_accessed=bytes_accessed),
    )(x_nhcw, w1m, b1c, w2m, b2c, sel)

    pooled = jnp.transpose(pool_nhcw, (0, 2, 1, 3))   # -> NCHW
    rest = jnp.transpose(rest_nhcw, (0, 2, 1, 3))     # -> NCHW
    return pooled, rest


def _reference_forward(x, w1, b1, w2, b2):
    """Plain-JAX (XLA) reference mirroring the PyTorch forward, for checking."""
    dn = ("NCHW", "OIHW", "NCHW")
    y = lax.conv_general_dilated(x, w1, (1, 1), "VALID", dimension_numbers=dn)
    y = jnp.maximum(y + b1.reshape(1, -1, 1, 1), 0.0)
    y = lax.conv_general_dilated(y, w2, (1, 1), "VALID", dimension_numbers=dn)
    y = jnp.maximum(y + b2.reshape(1, -1, 1, 1), 0.0)
    rest = y
    pooled = lax.reduce_window(y, -jnp.inf, lax.max,
                               (1, 1, 2, 2), (1, 1, 2, 2), "VALID")
    return pooled, rest


if __name__ == "__main__":
    # Small, deterministic setup: batch=2, in_channels=4, out_channels=8, 16x16 input.
    N, Cin, Cout, H, W = 2, 4, 8, 16, 16

    key = jax.random.PRNGKey(0)
    kx, kw1, kb1, kw2, kb2 = jax.random.split(key, 5)
    x = jax.random.normal(kx, (N, Cin, H, W), dtype=jnp.float32)
    w1 = jax.random.normal(kw1, (Cout, Cin, 3, 3), dtype=jnp.float32) * 0.1
    b1 = jax.random.normal(kb1, (Cout,), dtype=jnp.float32) * 0.1
    w2 = jax.random.normal(kw2, (Cout, Cout, 3, 3), dtype=jnp.float32) * 0.1
    b2 = jax.random.normal(kb2, (Cout,), dtype=jnp.float32) * 0.1

    pooled_xla, rest_xla = _reference_forward(x, w1, b1, w2, b2)

    # f32 MXU path, one batch element per (parallel) grid step (grid extent 2).
    pooled, rest = unet_down_block(x, w1, b1, w2, b2, batch_block=1)
    jax.block_until_ready((pooled, rest))
    assert pooled.shape == (N, Cout, (H - 4) // 2, (W - 4) // 2)
    assert rest.shape == (N, Cout, H - 4, W - 4)
    assert jnp.allclose(pooled, pooled_xla, atol=5e-3, rtol=5e-3)
    assert jnp.allclose(rest, rest_xla, atol=5e-3, rtol=5e-3)

    # bf16 MXU operands (f32 accumulate); keep batch_block=1 so the parallel
    # grid extent stays >= 2 (both v7x TensorCores busy).
    pooled_bf, rest_bf = unet_down_block(x, w1, b1, w2, b2,
                                         batch_block=1, mxu_dtype=jnp.bfloat16)
    jax.block_until_ready((pooled_bf, rest_bf))
    assert jnp.allclose(pooled_bf, pooled_xla, atol=5e-2, rtol=5e-2)
    assert jnp.allclose(rest_bf, rest_xla, atol=5e-2, rtol=5e-2)

    print("KERNEL_OK")
</pallas_src>

<mosaic_0001>
module attributes {stable_mosaic.version = 11 : i64} {
  func.func @_unet_down_kernel(%arg0: i32, %arg1: memref<1x16x4x16xf32, #tpu.memory_space<vmem>>, %arg2: memref<8x36xf32, #tpu.memory_space<vmem>>, %arg3: memref<8x1xf32, #tpu.memory_space<vmem>>, %arg4: memref<8x72xf32, #tpu.memory_space<vmem>>, %arg5: memref<8x1xf32, #tpu.memory_space<vmem>>, %arg6: memref<11x6xf32, #tpu.memory_space<vmem>>, %arg7: memref<1x6x8x6xf32, #tpu.memory_space<vmem>>, %arg8: memref<1x12x8x12xf32, #tpu.memory_space<vmem>>) attributes {dimension_semantics = [#tpu.dimension_semantics<parallel>], iteration_bounds = array<i64: 2>, scalar_prefetch = 0 : i64, scratch_operands = 0 : i64, tpu.core_type = #tpu.core_type<tc>, window_params = [{transform_indices = @transform_0, window_bounds = array<i64: 1, 16, 4, 16>}, {pipeline_mode = #tpu.pipeline_mode<synchronous>, transform_indices = @transform_1, window_bounds = array<i64: 8, 36>}, {pipeline_mode = #tpu.pipeline_mode<synchronous>, transform_indices = @transform_2, window_bounds = array<i64: 8, 1>}, {pipeline_mode = #tpu.pipeline_mode<synchronous>, transform_indices = @transform_3, window_bounds = array<i64: 8, 72>}, {pipeline_mode = #tpu.pipeline_mode<synchronous>, transform_indices = @transform_4, window_bounds = array<i64: 8, 1>}, {pipeline_mode = #tpu.pipeline_mode<synchronous>, transform_indices = @transform_5, window_bounds = array<i64: 11, 6>}, {transform_indices = @transform_6, window_bounds = array<i64: 1, 6, 8, 6>}, {transform_indices = @transform_7, window_bounds = array<i64: 1, 12, 8, 12>}]} {
    %c0 = arith.constant 0 : index
    %c0_0 = arith.constant 0 : index
    %c0_1 = arith.constant 0 : index
    %c0_2 = arith.constant 0 : index
    %0 = vector.load %arg1[%c0, %c0_0, %c0_1, %c0_2] : memref<1x16x4x16xf32, #tpu.memory_space<vmem>>, vector<1x16x4x16xf32>
    %c0_3 = arith.constant 0 : index
    %c0_4 = arith.constant 0 : index
    %1 = vector.load %arg2[%c0_3, %c0_4] : memref<8x36xf32, #tpu.memory_space<vmem>>, vector<8x36xf32>
    %c0_5 = arith.constant 0 : index
    %c0_6 = arith.constant 0 : index
    %2 = vector.load %arg3[%c0_5, %c0_6] : memref<8x1xf32, #tpu.memory_space<vmem>>, vector<8x1xf32>
    %3 = vector.extract_strided_slice %0 {offsets = [0, 0, 0, 0], sizes = [1, 16, 4, 14], strides = [1, 1, 1, 1]} : vector<1x16x4x16xf32> to vector<1x16x4x14xf32>
    %4 = vector.extract_strided_slice %0 {offsets = [0, 0, 0, 1], sizes = [1, 16, 4, 14], strides = [1, 1, 1, 1]} : vector<1x16x4x16xf32> to vector<1x16x4x14xf32>
    %5 = vector.extract_strided_slice %0 {offsets = [0, 0, 0, 2], sizes = [1, 16, 4, 14], strides = [1, 1, 1, 1]} : vector<1x16x4x16xf32> to vector<1x16x4x14xf32>
    %6 = vector.extract_strided_slice %3 {offsets = [0, 0, 0, 0], sizes = [1, 14, 4, 14], strides = [1, 1, 1, 1]} : vector<1x16x4x14xf32> to vector<1x14x4x14xf32>
    %7 = vector.extract_strided_slice %4 {offsets = [0, 0, 0, 0], sizes = [1, 14, 4, 14], strides = [1, 1, 1, 1]} : vector<1x16x4x14xf32> to vector<1x14x4x14xf32>
    %8 = vector.extract_strided_slice %5 {offsets = [0, 0, 0, 0], sizes = [1, 14, 4, 14], strides = [1, 1, 1, 1]} : vector<1x16x4x14xf32> to vector<1x14x4x14xf32>
    %9 = vector.extract_strided_slice %3 {offsets = [0, 1, 0, 0], sizes = [1, 14, 4, 14], strides = [1, 1, 1, 1]} : vector<1x16x4x14xf32> to vector<1x14x4x14xf32>
    %10 = vector.extract_strided_slice %4 {offsets = [0, 1, 0, 0], sizes = [1, 14, 4, 14], strides = [1, 1, 1, 1]} : vector<1x16x4x14xf32> to vector<1x14x4x14xf32>
    %11 = vector.extract_strided_slice %5 {offsets = [0, 1, 0, 0], sizes = [1, 14, 4, 14], strides = [1, 1, 1, 1]} : vector<1x16x4x14xf32> to vector<1x14x4x14xf32>
    %12 = vector.extract_strided_slice %3 {offsets = [0, 2, 0, 0], sizes = [1, 14, 4, 14], strides = [1, 1, 1, 1]} : vector<1x16x4x14xf32> to vector<1x14x4x14xf32>
    %13 = vector.extract_strided_slice %4 {offsets = [0, 2, 0, 0], sizes = [1, 14, 4, 14], strides = [1, 1, 1, 1]} : vector<1x16x4x14xf32> to vector<1x14x4x14xf32>
    %14 = vector.extract_strided_slice %5 {offsets = [0, 2, 0, 0], sizes = [1, 14, 4, 14], strides = [1, 1, 1, 1]} : vector<1x16x4x14xf32> to vector<1x14x4x14xf32>
    %15 = tpu.concatenate %6, %7, %8, %9, %10, %11, %12, %13, %14 in 2 : vector<1x14x4x14xf32>, vector<1x14x4x14xf32>, vector<1x14x4x14xf32>, vector<1x14x4x14xf32>, vector<1x14x4x14xf32>, vector<1x14x4x14xf32>, vector<1x14x4x14xf32>, vector<1x14x4x14xf32>, vector<1x14x4x14xf32> -> vector<1x14x36x14xf32>
    %16 = vector.shape_cast %15 : vector<1x14x36x14xf32> to vector<14x36x14xf32>
    %17 = vector.shape_cast %1 : vector<8x36xf32> to vector<1x8x36xf32>
    %18 = vector.broadcast %17 : vector<1x8x36xf32> to vector<14x8x36xf32>
    "tpu.trace_start"() <{level = 10 : i32, message = "bok,bkw->bow"}> : () -> ()
    %cst = arith.constant dense<0.000000e+00> : vector<14x8x14xf32>
    %19 = tpu.matmul %18, %16, %cst {dimension_numbers = #tpu.dot_dimension_numbers<[2], [1], [1], [2], [0, 0, 0, 1, 1, 2], [0], [0]>} : vector<14x8x36xf32>, vector<14x36x14xf32>, vector<14x8x14xf32> -> vector<14x8x14xf32>
    "tpu.trace_stop"() : () -> ()
    %20 = vector.shape_cast %19 : vector<14x8x14xf32> to vector<1x14x8x14xf32>
    %21 = vector.shape_cast %2 : vector<8x1xf32> to vector<1x1x8x1xf32>
    %22 = vector.broadcast %21 : vector<1x1x8x1xf32> to vector<1x14x8x14xf32>
    %23 = arith.addf %20, %22 : vector<1x14x8x14xf32>
    %cst_7 = arith.constant 0.000000e+00 : f32
    %24 = vector.broadcast %cst_7 : f32 to vector<1x14x8x14xf32>
    %25 = arith.maximumf %23, %24 : vector<1x14x8x14xf32>
    %c0_8 = arith.constant 0 : index
    %c0_9 = arith.constant 0 : index
    %26 = vector.load %arg4[%c0_8, %c0_9] : memref<8x72xf32, #tpu.memory_space<vmem>>, vector<8x72xf32>
    %c0_10 = arith.constant 0 : index
    %c0_11 = arith.constant 0 : index
    %27 = vector.load %arg5[%c0_10, %c0_11] : memref<8x1xf32, #tpu.memory_space<vmem>>, vector<8x1xf32>
    %28 = vector.extract_strided_slice %25 {offsets = [0, 0, 0, 0], sizes = [1, 14, 8, 12], strides = [1, 1, 1, 1]} : vector<1x14x8x14xf32> to vector<1x14x8x12xf32>
    %29 = vector.extract_strided_slice %25 {offsets = [0, 0, 0, 1], sizes = [1, 14, 8, 12], strides = [1, 1, 1, 1]} : vector<1x14x8x14xf32> to vector<1x14x8x12xf32>
    %30 = vector.extract_strided_slice %25 {offsets = [0, 0, 0, 2], sizes = [1, 14, 8, 12], strides = [1, 1, 1, 1]} : vector<1x14x8x14xf32> to vector<1x14x8x12xf32>
    %31 = vector.extract_strided_slice %28 {offsets = [0, 0, 0, 0], sizes = [1, 12, 8, 12], strides = [1, 1, 1, 1]} : vector<1x14x8x12xf32> to vector<1x12x8x12xf32>
    %32 = vector.extract_strided_slice %29 {offsets = [0, 0, 0, 0], sizes = [1, 12, 8, 12], strides = [1, 1, 1, 1]} : vector<1x14x8x12xf32> to vector<1x12x8x12xf32>
    %33 = vector.extract_strided_slice %30 {offsets = [0, 0, 0, 0], sizes = [1, 12, 8, 12], strides = [1, 1, 1, 1]} : vector<1x14x8x12xf32> to vector<1x12x8x12xf32>
    %34 = vector.extract_strided_slice %28 {offsets = [0, 1, 0, 0], sizes = [1, 12, 8, 12], strides = [1, 1, 1, 1]} : vector<1x14x8x12xf32> to vector<1x12x8x12xf32>
    %35 = vector.extract_strided_slice %29 {offsets = [0, 1, 0, 0], sizes = [1, 12, 8, 12], strides = [1, 1, 1, 1]} : vector<1x14x8x12xf32> to vector<1x12x8x12xf32>
    %36 = vector.extract_strided_slice %30 {offsets = [0, 1, 0, 0], sizes = [1, 12, 8, 12], strides = [1, 1, 1, 1]} : vector<1x14x8x12xf32> to vector<1x12x8x12xf32>
    %37 = vector.extract_strided_slice %28 {offsets = [0, 2, 0, 0], sizes = [1, 12, 8, 12], strides = [1, 1, 1, 1]} : vector<1x14x8x12xf32> to vector<1x12x8x12xf32>
    %38 = vector.extract_strided_slice %29 {offsets = [0, 2, 0, 0], sizes = [1, 12, 8, 12], strides = [1, 1, 1, 1]} : vector<1x14x8x12xf32> to vector<1x12x8x12xf32>
    %39 = vector.extract_strided_slice %30 {offsets = [0, 2, 0, 0], sizes = [1, 12, 8, 12], strides = [1, 1, 1, 1]} : vector<1x14x8x12xf32> to vector<1x12x8x12xf32>
    %40 = tpu.concatenate %31, %32, %33, %34, %35, %36, %37, %38, %39 in 2 : vector<1x12x8x12xf32>, vector<1x12x8x12xf32>, vector<1x12x8x12xf32>, vector<1x12x8x12xf32>, vector<1x12x8x12xf32>, vector<1x12x8x12xf32>, vector<1x12x8x12xf32>, vector<1x12x8x12xf32>, vector<1x12x8x12xf32> -> vector<1x12x72x12xf32>
    %41 = vector.shape_cast %40 : vector<1x12x72x12xf32> to vector<12x72x12xf32>
    %42 = vector.shape_cast %26 : vector<8x72xf32> to vector<1x8x72xf32>
    %43 = vector.broadcast %42 : vector<1x8x72xf32> to vector<12x8x72xf32>
    "tpu.trace_start"() <{level = 10 : i32, message = "bok,bkw->bow"}> : () -> ()
    %cst_12 = arith.constant dense<0.000000e+00> : vector<12x8x12xf32>
    %44 = tpu.matmul %43, %41, %cst_12 {dimension_numbers = #tpu.dot_dimension_numbers<[2], [1], [1], [2], [0, 0, 0, 1, 1, 2], [0], [0]>} : vector<12x8x72xf32>, vector<12x72x12xf32>, vector<12x8x12xf32> -> vector<12x8x12xf32>
    "tpu.trace_stop"() : () -> ()
    %45 = vector.shape_cast %44 : vector<12x8x12xf32> to vector<1x12x8x12xf32>
    %46 = vector.shape_cast %27 : vector<8x1xf32> to vector<1x1x8x1xf32>
    %47 = vector.broadcast %46 : vector<1x1x8x1xf32> to vector<1x12x8x12xf32>
    %48 = arith.addf %45, %47 : vector<1x12x8x12xf32>
    %cst_13 = arith.constant 0.000000e+00 : f32
    %49 = vector.broadcast %cst_13 : f32 to vector<1x12x8x12xf32>
    %50 = arith.maximumf %48, %49 : vector<1x12x8x12xf32>
    %c0_14 = arith.constant 0 : index
    %c0_15 = arith.constant 0 : index
    %c0_16 = arith.constant 0 : index
    %c0_17 = arith.constant 0 : index
    %51 = vector.load %arg8[%c0_14, %c0_15, %c0_16, %c0_17] : memref<1x12x8x12xf32, #tpu.memory_space<vmem>>, vector<1x12x8x12xf32>
    tpu.vector_store %arg8[%c0_14, %c0_15, %c0_16, %c0_17], %50 {strides = array<i32>} : memref<1x12x8x12xf32, #tpu.memory_space<vmem>>, vector<1x12x8x12xf32>,
    %52 = vector.shape_cast %50 : vector<1x12x8x12xf32> to vector<1x6x2x8x12xf32>
    %53 = vector.extract_strided_slice %52 {offsets = [0, 0, 0, 0, 0], sizes = [1, 6, 1, 8, 12], strides = [1, 1, 1, 1, 1]} : vector<1x6x2x8x12xf32> to vector<1x6x1x8x12xf32>
    %54 = vector.shape_cast %53 : vector<1x6x1x8x12xf32> to vector<1x6x8x12xf32>
    %55 = vector.extract_strided_slice %52 {offsets = [0, 0, 1, 0, 0], sizes = [1, 6, 1, 8, 12], strides = [1, 1, 1, 1, 1]} : vector<1x6x2x8x12xf32> to vector<1x6x1x8x12xf32>
    %56 = vector.shape_cast %55 : vector<1x6x1x8x12xf32> to vector<1x6x8x12xf32>
    %57 = arith.maximumf %54, %56 : vector<1x6x8x12xf32>
    %58 = vector.extract_strided_slice %57 {offsets = [0, 0, 0, 0], sizes = [1, 6, 8, 11], strides = [1, 1, 1, 1]} : vector<1x6x8x12xf32> to vector<1x6x8x11xf32>
    %59 = vector.extract_strided_slice %57 {offsets = [0, 0, 0, 1], sizes = [1, 6, 8, 11], strides = [1, 1, 1, 1]} : vector<1x6x8x12xf32> to vector<1x6x8x11xf32>
    %60 = arith.maximumf %58, %59 : vector<1x6x8x11xf32>
    %61 = vector.shape_cast %60 : vector<1x6x8x11xf32> to vector<6x8x11xf32>
    %c0_18 = arith.constant 0 : index
    %c0_19 = arith.constant 0 : index
    %62 = vector.load %arg6[%c0_18, %c0_19] : memref<11x6xf32, #tpu.memory_space<vmem>>, vector<11x6xf32>
    %63 = vector.shape_cast %62 : vector<11x6xf32> to vector<1x11x6xf32>
    %64 = vector.broadcast %63 : vector<1x11x6xf32> to vector<6x11x6xf32>
    "tpu.trace_start"() <{level = 10 : i32, message = "bcw,bwp->bcp"}> : () -> ()
    %cst_20 = arith.constant dense<0.000000e+00> : vector<6x8x6xf32>
    %65 = tpu.matmul %61, %64, %cst_20 {dimension_numbers = #tpu.dot_dimension_numbers<[2], [1], [1], [2], [0, 0, 0, 1, 1, 2], [0], [0]>} : vector<6x8x11xf32>, vector<6x11x6xf32>, vector<6x8x6xf32> -> vector<6x8x6xf32>
    "tpu.trace_stop"() : () -> ()
    %66 = vector.shape_cast %65 : vector<6x8x6xf32> to vector<1x6x8x6xf32>
    %c0_21 = arith.constant 0 : index
    %c0_22 = arith.constant 0 : index
    %c0_23 = arith.constant 0 : index
    %c0_24 = arith.constant 0 : index
    %67 = vector.load %arg7[%c0_21, %c0_22, %c0_23, %c0_24] : memref<1x6x8x6xf32, #tpu.memory_space<vmem>>, vector<1x6x8x6xf32>
    tpu.vector_store %arg7[%c0_21, %c0_22, %c0_23, %c0_24], %66 {strides = array<i32>} : memref<1x6x8x6xf32, #tpu.memory_space<vmem>>, vector<1x6x8x6xf32>,
    return
  }
  func.func @transform_0(%arg0: i32) -> (i32, i32, i32, i32) {
    %c0_i32 = arith.constant 0 : i32
    %c0_i32_0 = arith.constant 0 : i32
    %c0_i32_1 = arith.constant 0 : i32
    %c0_i32_2 = arith.constant 0 : i32
    return %arg0, %c0_i32, %c0_i32_0, %c0_i32_1 : i32, i32, i32, i32
  }
  func.func @transform_1(%arg0: i32) -> (i32, i32) {
    %c0_i32 = arith.constant 0 : i32
    %c0_i32_0 = arith.constant 0 : i32
    %c0_i32_1 = arith.constant 0 : i32
    return %c0_i32, %c0_i32_0 : i32, i32
  }
  func.func @transform_2(%arg0: i32) -> (i32, i32) {
    %c0_i32 = arith.constant 0 : i32
    %c0_i32_0 = arith.constant 0 : i32
    %c0_i32_1 = arith.constant 0 : i32
    return %c0_i32, %c0_i32_0 : i32, i32
  }
  func.func @transform_3(%arg0: i32) -> (i32, i32) {
    %c0_i32 = arith.constant 0 : i32
    %c0_i32_0 = arith.constant 0 : i32
    %c0_i32_1 = arith.constant 0 : i32
    return %c0_i32, %c0_i32_0 : i32, i32
  }
  func.func @transform_4(%arg0: i32) -> (i32, i32) {
    %c0_i32 = arith.constant 0 : i32
    %c0_i32_0 = arith.constant 0 : i32
    %c0_i32_1 = arith.constant 0 : i32
    return %c0_i32, %c0_i32_0 : i32, i32
  }
  func.func @transform_5(%arg0: i32) -> (i32, i32) {
    %c0_i32 = arith.constant 0 : i32
    %c0_i32_0 = arith.constant 0 : i32
    %c0_i32_1 = arith.constant 0 : i32
    return %c0_i32, %c0_i32_0 : i32, i32
  }
  func.func @transform_6(%arg0: i32) -> (i32, i32, i32, i32) {
    %c0_i32 = arith.constant 0 : i32
    %c0_i32_0 = arith.constant 0 : i32
    %c0_i32_1 = arith.constant 0 : i32
    %c0_i32_2 = arith.constant 0 : i32
    return %arg0, %c0_i32, %c0_i32_0, %c0_i32_1 : i32, i32, i32, i32
  }
  func.func @transform_7(%arg0: i32) -> (i32, i32, i32, i32) {
    %c0_i32 = arith.constant 0 : i32
    %c0_i32_0 = arith.constant 0 : i32
    %c0_i32_1 = arith.constant 0 : i32
    %c0_i32_2 = arith.constant 0 : i32
    return %arg0, %c0_i32, %c0_i32_0, %c0_i32_1 : i32, i32, i32, i32
  }
}

</mosaic_0001>

<bundles_post_ra>
// kernel: tpu_custom_call.1
= control target key start
LH: loop header
LB: loop body
LE: loop exit
PB: predicated region body
PF: predicated region fallthrough
CT: control target
= control target key end

     0   :  { %13 = vsyncpa [#allocation3], 0  ;;  %s5468_s0 = inlined_call_operand.hbm [shape: f32[2,16,4,16], index: 0, kind: input, shape index: {}]   ;;  %s5469_s1 = inlined_call_operand.vmem [shape: f32[8,36], index: 1, kind: input, shape index: {}]   ;;  %s5470_s2 = inlined_call_operand.vmem [shape: f32[8,1], index: 2, kind: input, shape index: {}]   ;;  %s5471_s3 = inlined_call_operand.vmem [shape: f32[8,72], index: 3, kind: input, shape index: {}]   ;;  %s5472_s4 = inlined_call_operand.vmem [shape: f32[8,1], index: 4, kind: input, shape index: {}]   ;;  %s5473_s5 = inlined_call_operand.vmem [shape: f32[11,6], index: 5, kind: input, shape index: {}]   ;;  %s5474_s6 = inlined_call_operand.vmem [shape: f32[2,6,8,6], index: 6, kind: output, shape index: {0}]   ;;  %s5475_s7 = inlined_call_operand.hbm [shape: f32[2,12,8,12], index: 7, kind: output, shape index: {1}]  }
   0x1   :  { %15 = vsyncpa [#allocation3 + $0x1], 0 }
   0x2   :  { %16 = vsyncpa [#allocation4], 0 }
   0x3   :  { %18 = vsyncpa [#allocation4 + $0x1], 0  ;;  %s4559_s24 = smov 0   ;;  %s4561_s25 = smov 0  }
   0x4   :  { %s4563_s26 = smov 0   ;;  %s4565_s27 = smov 0  }
   0x5 LB: > { %s4580_s28 = sadd.s32 4294967295, %s4504_s27   ;;  %s3236_s29 = sadd.s32 4294967294, %s4504_s27   ;;  %s4504_s27 = sphi %s4565_s27, %s5490_s27   ;;  %s4500_s26 = sphi %s4563_s26, %s5489_s26   ;;  %s4496_s25 = sphi %s4561_s25, %s5488_s25   ;;  %s4492_s24 = sphi %s4559_s24, %s5487_s24  }
   0x6   : > { %s4584_s30 = sadd.s32 1, %s4504_s27   ;;  %s31_s8 = sadd.s32 1, %s4500_s26 }
   0x7   : > { %s28_s9 = ssub.s32 %s4504_s27, %s4584_s30  ;;  %p38_p0 = scmp.ne.s32.totalorder %s4500_s26, %s4496_s25 }
   0x8   : > { %p29_p1 = scmp.eq.s32.totalorder %s28_s9, 0  ;;  %p39_p2 = scmp.eq.s32.totalorder %s4504_s27, 0 }
   0x9   : > { %p44_p3 = scmp.ne.s32.totalorder %s4496_s25, %s4492_s24  ;;  %p45_p4 = scmp.eq.s32.totalorder %s4580_s28, 0 }
   0xa   : > { %s4596_s10 = scalar_select %p29_p1, %s4500_s26, %s31_s8  }
   0xb   : > { %p4598_p5 = por %p39_p2, %p38_p0  ;;  %p4602_p6 = por %p45_p4, %p44_p3 }
   0xc   : > { %p199_p7 = scmp.eq.s32.totalorder %s4580_s28, 1  ;;  %p205_p8 = scmp.eq.s32.totalorder %s3236_s29, 1 }
   0xd   : > { %p4266_p10 = scmp.lt.s32.totalorder %s4504_s27, 2  ;;  %s240_s15 = sand.u32 1, %s4500_s26  }
   0xe   : > { %p4609_p11 = por %p199_p7, %p38_p0  ;;  %p4613_p12 = por %p205_p8, %p44_p3 }
   0xf   : > { %s3300_s16 = sshll.u32 %s4504_s27, 10  ;;  %s3239_s17 = sshll.u32 %s240_s15, 6 }
  0x10   : > { %s5479_s13 = scalar_select %p4609_p11, 1, 0 }
  0x11   : > { %s5480_s14 = scalar_select %p4613_p12, 1, 0 }
  0x12   : > { %s4622_s20 = scalar_lea.hbm %s5468_s0, %s3300_s16  ;;  %s244_s21 = scalar_lea.vmem [#allocation2], %s3239_s17 }
  0x13   : > { %s251_s22 = sshll.u32 %s244_s21, 4  ;;  %p4626_p13 = pnand %p4266_p10, %p4598_p5  ;;  %s4630_s22 = int_to_ptr.vmem [resolvable:$true] %s251_s22 }
  0x14   : > { %s4632_s29 = scalar_lea.sflag [#allocation3], %s240_s15  ;;  %s4408_s8 = scalar_lea.hbm %s4622_s20, 1024 }
  0x15   : > { %p4409_p0 = scmp.ne.s32.totalorder %s4622_s20, %s4408_s8  ;;  %p4410_p1 = pneg %p4626_p13 }
  0x16   : > { %s4413_s16 = scalar_lea.hbm %s5468_s0, 2048  ;;  %p4414_p4 = scmp.lt.u32.totalorder %s4622_s20, %s5468_s0 }
  0x17   : > { %p4411_p2 = pnand %p4410_p1, %p4409_p0  ;;  %p4415_p5 = scmp.lt.u32.totalorder %s4413_s16, %s4408_s8 }
  0x18   : > { %p4417_p8 = scmp.lt.u32.totalorder %s4408_s8, %s4622_s20 }
  0x19   : > { %p4412_p3 = pneg %p4411_p2  ;;  %p4416_p7 = por %p4415_p5, %p4414_p4 }
  0x1b   : > { %p4418_p10 = por %p4417_p8, %p4416_p7 }
  0x1d   : > { %p4419_p9 = pnand %p4418_p10, %p4412_p3 }
  0x1f   : > { %4422 = shalt.err (!%p4419_p9)
}
  0x20   : > { %s4423_s15 = scalar_lea.vmem %s4630_s22, 1024  ;;  %s4506_s19 = smov [#allocation2]  }
  0x21   : > { %p4424_p0 = scmp.ne.s32.totalorder %s4630_s22, %s4423_s15  ;;  %s4428_s21 = sshll.u32 %s4506_s19, 4  ;;  %s4429_s21 = int_to_ptr.vmem [resolvable:$false] %s4428_s21 }
  0x22   : > { %s4430_s9 = scalar_lea.vmem %s4429_s21, 2048  ;;  %p4431_p11 = scmp.lt.s32.totalorder %s4630_s22, %s4429_s21 }
  0x23   : > { %p4426_p2 = pnand %p4424_p0, %p4410_p1  ;;  %p4432_p4 = scmp.lt.s32.totalorder %s4430_s9, %s4423_s15 }
  0x25   : > { %p4427_p12 = pneg %p4426_p2  ;;  %p4433_p5 = por %p4432_p4, %p4431_p11 }
  0x27   : > { %p4434_p7 = pnand %p4433_p5, %p4427_p12 }
  0x29   : > { %4437 = shalt.err (!%p4434_p7)
}
  0x2a   : > { %s4507_s8 = smov 64   ;;  %s4508_s11 = smov 4  }
  0x2b   : > { %4261 = dma.hbm_to_vmem [thread:$0]  (!%p4626_p13), %s4622_s20, 1024, %s4630_s22, %s4632_s29, %s4507_s8, %s4507_s8, %s4508_s11  }
  0x2c   : > { %p3242_p9 = scmp.ge.s32.totalorder %s4504_s27, 1  ;;  %p259_p1 = scmp.lt.s32.totalorder %s4504_s27, 3 }
  0x2e   : > { %p260_p3 = pnand %p3242_p9, %p259_p1 }
  0x2f   : > { %s4663_s16 = sand.u32 (!%p260_p3), 1, %s4496_s25  }
  0x30   : > { %263 = sbr.rel (%p260_p3) target bundleno = 1192 (0x4a8), region = 44  ;;  %s3243_s17 = sshll.u32 (!%p260_p3), %s4663_s16, 6 }
  0x31   : > { %s266_s18 = scalar_lea.sflag (!%p260_p3), [#allocation3], %s4663_s16  ;;  %s4667_s15 = scalar_lea.vmem (!%p260_p3), [#allocation2], %s3243_s17 }
  0x37   : > { %4483 = dma.done.wait (%p4602_p6), %s266_s18, 1024  }
  0x38   : > { %4485 = vsyncadd (%p4602_p6), %s266_s18, 4294966272  ;;  %v4674_v0 = vld [vmem:[%s4667_s15 + $0x4] sm:$0xf]  ;;  %v4677_v1 = vld [vmem:[%s4667_s15 + $0x8] sm:$0xf]  ;;  %v4509_v3 = vmov 0.0|0.0  }
  0x39   : > { %v4680_v2 = vld [vmem:[%s4667_s15] sm:$0xf]  ;;  %3999 = vmatprep.subr.bf16.mxu0 %v4509_v3  ;;  %4005 = vmatprep.subr.bf16.mxu1 %v4509_v3  ;;  %v4685_v4 = vrot.slane %v4677_v1, 4  ;;  %v4689_v6 = vrot.slane %v4674_v0, 4  ;;  %v4692_v7 = vld [vmem:[%s4667_s15 + $0xc] sm:$0xf] }
  0x3a   : > { %v342_v5 = vrot.slane %v4680_v2, 4  ;;  %s4510_s12 = smov 127   ;;  %v4316_v11 = vpack.i.bf16 %v4674_v0, %v4680_v2  ;;  %v4704_v12 = vrot.slane %v4692_v7, 4  ;;  %v4707_v13 = vld [vmem:[%s4667_s15 + $0x10] sm:$0xf]  ;;  %s4511_s20 = smov 126  }
  0x3b   : > { %v4321_v8 = vpack.i.bf16 %v4674_v0, %v4685_v4  ;;  %v4326_v10 = vpack.i.bf16 %v4685_v4, %v4689_v6  ;;  %v4714_v15 = vrot.slane %v4707_v13, 4  ;;  %v4717_v16 = vld [vmem:[%s4667_s15 + $0x14] sm:$0xf]  ;;  %vm4512_vm0 = vmmov 0   ;;  %v4737_v21 = vld [vmem:[%s4667_s15 + $0x18] sm:$0xf] }
  0x3c   : > { %v4311_v9 = vpack.i.bf16 %v4689_v6, %v342_v5  ;;  %v4331_v14 = vpack.i.bf16 %v4677_v1, %v4704_v12  ;;  %v4513_v17 = vmov 0.0   ;;  %v4729_v19 = vrot.slane %v4717_v16, 4  ;;  %v4746_v23 = vld [vmem:[%s4667_s15 + $0x1c] sm:$0xf]  ;;  %v4763_v27 = vld [vmem:[%s4667_s15 + $0x20] sm:$0xf] }
  0x3d   : > { %4322 = vrot.lane.b32.xlu1 %v4321_v8, %s4510_s12  ;;  %3533 = vmatprep.mubr.msk.f32.mxu0 %vm4512_vm0, %v4513_v17  ;;  %v4336_v18 = vpack.i.bf16 %v4692_v7, %v4714_v15  ;;  %v4743_v22 = vrot.slane %v4737_v21, 4  ;;  %v4755_v25 = vrot.slane %v4746_v23, 4  ;;  %v4769_v28 = vrot.slane %v4763_v27, 4  ;;  %v4772_v29 = vld [vmem:[%s4667_s15 + $0x24] sm:$0xf]  ;;  %s4251_s22 = smul.u32 96, %s4663_s16 }
  0x3e   : > { %4312 = vrot.lane.b32.xlu0 %v4311_v9, %s4510_s12  ;;  %3546 = vmatprep.mubr.msk.f32.mxu1 %vm4512_vm0, %v4513_v17  ;;  %v4341_v20 = vpack.i.bf16 %v4707_v13, %v4729_v19  ;;  %v4781_v31 = vrot.slane %v4772_v29, 4  ;;  %v4789_v33 = vld [vmem:[%s4667_s15 + $0x28] sm:$0xf]  ;;  %v4798_v35 = vld [vmem:[%s4667_s15 + $0x2c] sm:$0xf]  ;;  %v4514_v51 = vmov 0  }
  0x3f   : > { %v4346_v24 = vpack.i.bf16 %v4717_v16, %v4743_v22  ;;  %v4351_v26 = vpack.i.bf16 %v4737_v21, %v4755_v25  ;;  %v4356_v30 = vpack.i.bf16 %v4746_v23, %v4769_v28  ;;  %v4795_v34 = vrot.slane %v4789_v33, 4  ;;  %v4815_v39 = vld [vmem:[%s4667_s15 + $0x30] sm:$0xf]  ;;  %v4824_v41 = vld [vmem:[%s4667_s15 + $0x34] sm:$0xf]  ;;  %4396 = vset.pattern.permute.xlu1 %v4514_v51  ;;  %4407 = vset.pattern.permute.xlu0 %v4514_v51  ;;  %v327_v52 = vld [vmem:[%s5470_s2] sm:$0xff] }
  0x40   : > { %v4361_v32 = vpack.i.bf16 %v4763_v27, %v4781_v31  ;;  %v4807_v37 = vrot.slane %v4798_v35, 4  ;;  %v4821_v40 = vrot.slane %v4815_v39, 4  ;;  %v4833_v43 = vrot.slane %v4824_v41, 4  ;;  %v4841_v45 = vld [vmem:[%s4667_s15 + $0x38] sm:$0xf]  ;;  %v4900_v51 = vld [vmem:[%s5469_s1] sm:$0xff] }
  0x41   : > { %4327 = vrot.lane.b32.xlu1 %v4326_v10, %s4511_s20  ;;  %v4366_v36 = vpack.i.bf16 %v4772_v29, %v4795_v34  ;;  %v4847_v46 = vrot.slane %v4841_v45, 4  ;;  %v4850_v47 = vld [vmem:[%s4667_s15 + $0x3c] sm:$0xf]  ;;  %vm552_vm1 = vcmask 1043456   ;;  %vm597_vm2 = vcmask 293888   ;;  %s5332_s23 = scalar_lea.vmem [#allocation5], %s4251_s22 }
  0x42   : > { %4317 = vrot.lane.b32.xlu0 %v4316_v11, %s4511_s20  ;;  %v4371_v38 = vpack.i.bf16 %v4789_v33, %v4807_v37  ;;  %v4376_v42 = vpack.i.bf16 %v4798_v35, %v4821_v40  ;;  %v4381_v44 = vpack.i.bf16 %v4815_v39, %v4833_v43  ;;  %v541_v49 = vrot.slane %v4850_v47, 4  ;;  %s3138_s29 = sshll.u32 %s5332_s23, 4  ;;  %s3122_s8 = scalar_lea.sflag [#allocation4], %s4663_s16  ;;  %s5413_s29 = int_to_ptr.vmem [resolvable:$true] %s3138_s29 }
  0x43   : > { %v4386_v48 = vpack.i.bf16 %v4847_v46, %v4824_v41  ;;  %vm1742_vm3 = vcmask 588800   ;;  %vm2670_vm4 = vcmask 1042432   ;;  %vm4515_vm5 = vmmov 1   ;;  %s4438_s11 = scalar_lea.vmem %s5413_s29, 1536  ;;  %p5484_p11 = scmp.ne.s32.totalorder %s5479_s13, 0 }
  0x44   : > { %v4391_v50 = vpack.i.bf16 %v541_v49, %v4841_v45  ;;  %vm5315_vm6 = vmpackc.low %vm2670_vm4, %vm4515_vm5  ;;  %vm2615_vm7 = vcmask 97280   ;;  %vm2666_vm8 = vcmask 89088   ;;  %p4439_p6 = scmp.ne.s32.totalorder %s5413_s29, %s4438_s11  ;;  %s4516_s17 = smov [#allocation5]  }
  0x45   : > { %402 = vrot.lane.b32.xlu1 %v4677_v1, %s4511_s20  ;;  %s4442_s18 = sshll.u32 %s4516_s17, 4  ;;  %s4443_s18 = int_to_ptr.vmem [resolvable:$false] %s4442_s18 }
  0x46   : > { %4332 = vrot.lane.b32.xlu0 %v4331_v14, %s4510_s12  ;;  %p4440_p12 = pnand %p4439_p6, %p5484_p11  ;;  %s4444_s15 = scalar_lea.vmem %s4443_s18, 3072 }
  0x47   : > { %p4445_p8 = scmp.lt.s32.totalorder %s5413_s29, %s4443_s18  ;;  %p4446_p10 = scmp.lt.s32.totalorder %s4444_s15, %s4438_s11 }
  0x48   : > { %p4441_p13 = pneg %p4440_p12 }
  0x49   : > { %4337 = vrot.lane.b32.xlu1 %v4336_v18, %s4510_s12  ;;  %p4447_p0 = por %p4446_p10, %p4445_p8 }
  0x4a   : > { %404 = vrot.lane.b32.xlu0 %v4692_v7, %s4511_s20 }
  0x4b   : > { %p4448_p2 = pnand %p4447_p0, %p4441_p13 }
  0x4d   : > { %4342 = vrot.lane.b32.xlu1 %v4341_v20, %s4510_s12 }
  0x4e   : > { %502 = vrot.lane.b32.xlu0 %v4704_v12, %s4511_s20 }
  0x51   : > { %406 = vrot.lane.b32.xlu1 %v4707_v13, %s4511_s20 }
  0x52   : > { %504 = vrot.lane.b32.xlu0 %v4714_v15, %s4511_s20 }
  0x55   : > { %4347 = vrot.lane.b32.xlu1 %v4346_v24, %s4510_s12 }
  0x56   : > { %408 = vrot.lane.b32.xlu0 %v4717_v16, %s4511_s20 }
  0x59   : > { %4352 = vrot.lane.b32.xlu1 %v4351_v26, %s4510_s12 }
  0x5a   : > { %506 = vrot.lane.b32.xlu0 %v4729_v19, %s4511_s20 }
  0x5d   : > { %410 = vrot.lane.b32.xlu1 %v4737_v21, %s4511_s20 }
  0x5e   : > { %508 = vrot.lane.b32.xlu0 %v4743_v22, %s4511_s20 }
  0x61   : > { %4357 = vrot.lane.b32.xlu1 %v4356_v30, %s4510_s12 }
  0x62   : > { %412 = vrot.lane.b32.xlu0 %v4746_v23, %s4511_s20 }
  0x65   : > { %4362 = vrot.lane.b32.xlu1 %v4361_v32, %s4510_s12 }
  0x66   : > { %510 = vrot.lane.b32.xlu0 %v4755_v25, %s4511_s20 }
  0x69   : > { %414 = vrot.lane.b32.xlu1 %v4763_v27, %s4511_s20 }
  0x6a   : > { %512 = vrot.lane.b32.xlu0 %v4769_v28, %s4511_s20 }
  0x6d   : > { %4367 = vrot.lane.b32.xlu1 %v4366_v36, %s4510_s12 }
  0x6e   : > { %416 = vrot.lane.b32.xlu0 %v4772_v29, %s4511_s20 }
  0x71   : > { %4372 = vrot.lane.b32.xlu1 %v4371_v38, %s4510_s12 }
  0x72   : > { %514 = vrot.lane.b32.xlu0 %v4781_v31, %s4511_s20 }
  0x75   : > { %418 = vrot.lane.b32.xlu1 %v4789_v33, %s4511_s20 }
  0x76   : > { %516 = vrot.lane.b32.xlu0 %v4795_v34, %s4511_s20 }
  0x79   : > { %4377 = vrot.lane.b32.xlu1 %v4376_v42, %s4510_s12 }
  0x7a   : > { %420 = vrot.lane.b32.xlu0 %v4798_v35, %s4511_s20 }
  0x7d   : > { %4382 = vrot.lane.b32.xlu1 %v4381_v44, %s4510_s12 }
  0x7e   : > { %518 = vrot.lane.b32.xlu0 %v4807_v37, %s4511_s20 }
  0x81   : > { %422 = vrot.lane.b32.xlu1 %v4815_v39, %s4511_s20 }
  0x82   : > { %520 = vrot.lane.b32.xlu0 %v4821_v40, %s4511_s20 }
  0x85   : > { %4387 = vrot.lane.b32.xlu1 %v4386_v48, %s4510_s12 }
  0x86   : > { %424 = vrot.lane.b32.xlu0 %v4824_v41, %s4511_s20 }
  0x89   : > { %4392 = vrot.lane.b32.xlu1 %v4391_v50, %s4510_s12 }
  0x8a   : > { %522 = vrot.lane.b32.xlu0 %v4833_v43, %s4511_s20 }
  0x8d   : > { %548 = vrot.lane.b32.xlu1 %v4841_v45, %s4511_s20 }
  0x8e   : > { %524 = vrot.lane.b32.xlu0 %v4847_v46, %s4511_s20 }
  0x91   : > { %1611 = vperm.xlu1 %4396, %v327_v52  }
  0x92   : > { %550 = vrot.lane.b32.xlu0 %v4850_v47, %s4511_s20 }
  0xaf   : > { %v4323_v53 = vpop.permute.xlu1 %4322 }
  0xb0   : > { %v4313_v54 = vpop.permute.xlu0 %4312  ;;  %v4325_v57 = vunpack.i.h.bf16 %v4323_v53  ;;  %v4324_v60 = vunpack.i.l.bf16 %v4323_v53 }
  0xb1   : > { %v4314_v55 = vunpack.i.l.bf16 %v4313_v54  ;;  %v4315_v56 = vunpack.i.h.bf16 %v4313_v54 }
  0xb2   : > { %v555_v26 = vsel %vm552_vm1, %v4677_v1, %v4324_v60 }
  0xb3   : > { %v4328_v58 = vpop.permute.xlu1 %4327  ;;  %v553_v5 = vsel %vm552_vm1, %v4680_v2, %v4314_v55  ;;  %v554_v10 = vsel %vm552_vm1, %v4674_v0, %v4315_v56 }
  0xb4   : > { %v4318_v59 = vpop.permute.xlu0 %4317  ;;  %v4329_v61 = vunpack.i.l.bf16 %v4328_v58  ;;  %v4330_v8 = vunpack.i.h.bf16 %v4328_v58 }
  0xb5   : > { %v4320_v62 = vunpack.i.h.bf16 %v4318_v59  ;;  %v4319_v63 = vunpack.i.l.bf16 %v4318_v59 }
  0xb6   : > { %v581_v2 = vsel %vm552_vm1, %v4325_v57, %v4329_v61 }
  0xb7   : > { %v567_v9 = vsel %vm552_vm1, %v4319_v63, %v4689_v6  ;;  %v568_v11 = vsel %vm552_vm1, %v4320_v62, %v4685_v4  ;;  %v403_v14 = vpop.permute.xlu1 %402  ;;  %v4003_v38 = vpack.c.bf16 %v555_v26, %v581_v2 }
  0xb8   : > { %v4333_v18 = vpop.permute.xlu0 %4332  ;;  %v4000_v20 = vpack.c.bf16 %v567_v9, %v553_v5  ;;  %v4006_v24 = vpack.c.bf16 %v568_v11, %v554_v10 }
  0xb9   : > { %v4335_v30 = vunpack.i.h.bf16 %v4333_v18  ;;  %v4334_v32 = vunpack.i.l.bf16 %v4333_v18 }
  0xba   : > { %4001 = vmatpush3.bf16.msra.mxu0 %v4000_v20  ;;  %4007 = vmatpush3.bf16.msra.mxu1 %v4006_v24 }
  0xbb   : > { %v556_v6 = vsel %vm552_vm1, %v4692_v7, %v4334_v32  ;;  %4002 = vmatprep.subr.bf16.mxu0 %v4509_v3  ;;  %4008 = vmatprep.subr.bf16.mxu1 %v4509_v3  ;;  %v582_v0 = vsel %vm552_vm1, %v4335_v30, %v4330_v8  ;;  %v4338_v36 = vpop.permute.xlu1 %4337  ;;  %v569_v7 = vsel %vm552_vm1, %v403_v14, %v4704_v12 }
  0xbc   : > { %v405_v4 = vpop.permute.xlu0 %404  ;;  %v4009_v42 = vpack.c.bf16 %v556_v6, %v582_v0  ;;  %v4340_v1 = vunpack.i.h.bf16 %v4338_v36  ;;  %v4339_v44 = vunpack.i.l.bf16 %v4338_v36  ;;  %v4012_v12 = vpack.c.bf16 %v569_v7, %v555_v26 }
  0xbd   : > { %v570_v48 = vsel %vm552_vm1, %v405_v4, %v4714_v15 }
  0xbe   : > { %4004 = vmatpush3.bf16.msra.mxu0 %v4003_v38  ;;  %4010 = vmatpush3.bf16.msra.mxu1 %v4009_v42  ;;  %v557_v54 = vsel %vm552_vm1, %v4707_v13, %v4339_v44  ;;  %v4018_v15 = vpack.c.bf16 %v570_v48, %v556_v6 }
  0xbf   : > { %3531 = vmatprep.subr.mxu0 %v4513_v17  ;;  %3544 = vmatprep.subr.mxu1 %v4513_v17  ;;  %v4343_v50 = vpop.permute.xlu1 %4342 }
  0xc0   : > { %v503_v49 = vpop.permute.xlu0 %502  ;;  %v4345_v52 = vunpack.i.h.bf16 %v4343_v50  ;;  %v4344_v53 = vunpack.i.l.bf16 %v4343_v50 }
  0xc1   : > { %v583_v55 = vsel %vm552_vm1, %v4340_v1, %v503_v49 }
  0xc2   : > { %3532 = vmatpush3.msk.msra.mxu0 %vm552_vm1, %v403_v14  ;;  %3545 = vmatpush3.msk.msra.mxu1 %vm552_vm1, %v405_v4  ;;  %v558_v56 = vsel %vm552_vm1, %v4717_v16, %v4344_v53  ;;  %v4015_v58 = vpack.c.bf16 %v557_v54, %v583_v55 }
  0xc3   : > { %3534 = vmatmul.mubr.msk.f32.vlgmr.msra.gmra.mrb[0].mxu0 %vm597_vm2, %v4900_v51  ;;  %3547 = vmatmul.mubr.msk.f32.vlgmr.msra.gmra.mrb[0].mxu1 %vm597_vm2, %v4900_v51  ;;  %v407_v57 = vpop.permute.xlu1 %406 }
  0xc4   : > { %4011 = vmatprep.subr.bf16.mxu0 %v4509_v3  ;;  %4017 = vmatprep.subr.bf16.mxu1 %v4509_v3  ;;  %v505_v13 = vpop.permute.xlu0 %504  ;;  %v571_v8 = vsel %vm552_vm1, %v407_v57, %v4729_v19 }
  0xc5   : > { %v584_v59 = vsel %vm552_vm1, %v4345_v52, %v505_v13  ;;  %4013 = vmatpush3.bf16.msra.mxu0 %v4012_v12  ;;  %4019 = vmatpush3.bf16.msra.mxu1 %v4018_v15  ;;  %v4024_v24 = vpack.c.bf16 %v571_v8, %v557_v54 }
  0xc6   : > { %v4021_v60 = vpack.c.bf16 %v558_v56, %v584_v59  ;;  %4014 = vmatprep.subr.bf16.mxu0 %v4509_v3  ;;  %4020 = vmatprep.subr.bf16.mxu1 %v4509_v3 }
  0xc7   : > { %3559 = vmatprep.mubr.msk.f32.mxu0 %vm4512_vm0, %v4513_v17  ;;  %3572 = vmatprep.mubr.msk.f32.mxu1 %vm4512_vm0, %v4513_v17  ;;  %v4348_v61 = vpop.permute.xlu1 %4347 }
  0xc8   : > { %v409_v16 = vpop.permute.xlu0 %408  ;;  %v4350_v63 = vunpack.i.h.bf16 %v4348_v61  ;;  %v4349_v5 = vunpack.i.l.bf16 %v4348_v61 }
  0xc9   : > { %v572_v62 = vsel %vm552_vm1, %v409_v16, %v4743_v22  ;;  %4016 = vmatpush3.bf16.msra.mxu0 %v4015_v58  ;;  %4022 = vmatpush3.bf16.msra.mxu1 %v4021_v60 }
  0xca   : > { %3557 = vmatprep.subr.mxu0 %v4513_v17  ;;  %3570 = vmatprep.subr.mxu1 %v4513_v17  ;;  %v4030_v9 = vpack.c.bf16 %v572_v62, %v558_v56  ;;  %v559_v14 = vsel %vm552_vm1, %v4737_v21, %v4349_v5 }
  0xcb   : > { %v4353_v11 = vpop.permute.xlu1 %4352 }
  0xcc   : > { %v507_v10 = vpop.permute.xlu0 %506  ;;  %v4355_v22 = vunpack.i.h.bf16 %v4353_v11  ;;  %v4354_v20 = vunpack.i.l.bf16 %v4353_v11 }
  0xcd   : > { %v585_v18 = vsel %vm552_vm1, %v4350_v63, %v507_v10  ;;  %3558 = vmatpush3.msk.msra.mxu0 %vm552_vm1, %v407_v57  ;;  %3571 = vmatpush3.msk.msra.mxu1 %vm552_vm1, %v409_v16 }
  0xce   : > { %3560 = vmatmul.mubr.msk.f32.vlgmr.msra.gmra.mrb[2].mxu0 %vm597_vm2, %v4900_v51  ;;  %3573 = vmatmul.mubr.msk.f32.vlgmr.msra.gmra.mrb[2].mxu1 %vm597_vm2, %v4900_v51  ;;  %v560_v19 = vsel %vm552_vm1, %v4746_v23, %v4354_v20  ;;  %v4027_v21 = vpack.c.bf16 %v559_v14, %v585_v18 }
  0xcf   : > { %4023 = vmatprep.subr.bf16.mxu0 %v4509_v3  ;;  %4029 = vmatprep.subr.bf16.mxu1 %v4509_v3  ;;  %v411_v30 = vpop.permute.xlu1 %410 }
  0xd0   : > { %4025 = vmatpush3.bf16.msra.mxu0 %v4024_v24  ;;  %4031 = vmatpush3.bf16.msra.mxu1 %v4030_v9  ;;  %v509_v26 = vpop.permute.xlu0 %508  ;;  %v573_v23 = vsel %vm552_vm1, %v411_v30, %v4755_v25 }
  0xd1   : > { %v586_v32 = vsel %vm552_vm1, %v4355_v22, %v509_v26  ;;  %4026 = vmatprep.subr.bf16.mxu0 %v4509_v3  ;;  %4032 = vmatprep.subr.bf16.mxu1 %v4509_v3  ;;  %v4036_v42 = vpack.c.bf16 %v573_v23, %v559_v14 }
  0xd2   : > { %v4033_v2 = vpack.c.bf16 %v560_v19, %v586_v32  ;;  %3585 = vmatprep.mubr.msk.f32.mxu0 %vm4512_vm0, %v4513_v17  ;;  %3598 = vmatprep.mubr.msk.f32.mxu1 %vm4512_vm0, %v4513_v17 }
  0xd3   : > { %v4358_v0 = vpop.permute.xlu1 %4357 }
  0xd4   : > { %4028 = vmatpush3.bf16.msra.mxu0 %v4027_v21  ;;  %v413_v6 = vpop.permute.xlu0 %412  ;;  %4034 = vmatpush3.bf16.msra.mxu1 %v4033_v2  ;;  %v4360_v36 = vunpack.i.h.bf16 %v4358_v0  ;;  %v4359_v38 = vunpack.i.l.bf16 %v4358_v0 }
  0xd5   : > { %v574_v4 = vsel %vm552_vm1, %v413_v6, %v4769_v28  ;;  %3583 = vmatprep.subr.mxu0 %v4513_v17  ;;  %3596 = vmatprep.subr.mxu1 %v4513_v17 }
  0xd6   : > { %v561_v1 = vsel %vm552_vm1, %v4763_v27, %v4359_v38  ;;  %v4042_v44 = vpack.c.bf16 %v574_v4, %v560_v19 }
  0xd7   : > { %v4363_v7 = vpop.permute.xlu1 %4362 }
  0xd8   : > { %3584 = vmatpush3.msk.msra.mxu0 %vm552_vm1, %v411_v30  ;;  %v511_v25 = vpop.permute.xlu0 %510  ;;  %3597 = vmatpush3.msk.msra.mxu1 %vm552_vm1, %v413_v6  ;;  %v4365_v48 = vunpack.i.h.bf16 %v4363_v7  ;;  %v4364_v49 = vunpack.i.l.bf16 %v4363_v7 }
  0xd9   : > { %3586 = vmatmul.mubr.msk.f32.vlgmr.msra.gmra.mrb[4].mxu0 %vm597_vm2, %v4900_v51  ;;  %4035 = vmatprep.subr.bf16.mxu0 %v4509_v3  ;;  %v587_v28 = vsel %vm552_vm1, %v4360_v36, %v511_v25 }
  0xda   : > { %v4039_v50 = vpack.c.bf16 %v561_v1, %v587_v28  ;;  %4037 = vmatpush3.bf16.msra.mxu0 %v4036_v42  ;;  %3599 = vmatmul.mubr.msk.f32.vlgmr.msra.gmra.mrb[4].mxu1 %vm597_vm2, %v4900_v51  ;;  %v562_v27 = vsel %vm552_vm1, %v4772_v29, %v4364_v49 }
  0xdb   : > { %4038 = vmatprep.subr.bf16.mxu0 %v4509_v3  ;;  %4041 = vmatprep.subr.bf16.mxu1 %v4509_v3  ;;  %v415_v53 = vpop.permute.xlu1 %414 }
  0xdc   : > { %v513_v52 = vpop.permute.xlu0 %512  ;;  %4043 = vmatpush3.bf16.msra.mxu1 %v4042_v44  ;;  %3611 = vmatprep.mubr.msk.f32.mxu0 %vm4512_vm0, %v4513_v17  ;;  %v575_v55 = vsel %vm552_vm1, %v415_v53, %v4781_v31 }
  0xdd   : > { %v588_v54 = vsel %vm552_vm1, %v4365_v48, %v513_v52  ;;  %4044 = vmatprep.subr.bf16.mxu1 %v4509_v3  ;;  %3624 = vmatprep.mubr.msk.f32.mxu1 %vm4512_vm0, %v4513_v17  ;;  %v4048_v29 = vpack.c.bf16 %v575_v55, %v561_v1 }
  0xde   : > { %v4045_v12 = vpack.c.bf16 %v562_v27, %v588_v54  ;;  %4040 = vmatpush3.bf16.msra.mxu0 %v4039_v50 }
  0xdf   : > { %3609 = vmatprep.subr.mxu0 %v4513_v17  ;;  %v4368_v56 = vpop.permute.xlu1 %4367 }
  0xe0   : > { %v417_v15 = vpop.permute.xlu0 %416  ;;  %4046 = vmatpush3.bf16.msra.mxu1 %v4045_v12  ;;  %v4370_v57 = vunpack.i.h.bf16 %v4368_v56  ;;  %v4369_v58 = vunpack.i.l.bf16 %v4368_v56 }
  0xe1   : > { %v576_v13 = vsel %vm552_vm1, %v417_v15, %v4795_v34  ;;  %3622 = vmatprep.subr.mxu1 %v4513_v17 }
  0xe2   : > { %3610 = vmatpush3.msk.msra.mxu0 %vm552_vm1, %v415_v53  ;;  %v4054_v31 = vpack.c.bf16 %v576_v13, %v562_v27  ;;  %v563_v59 = vsel %vm552_vm1, %v4789_v33, %v4369_v58 }
  0xe3   : > { %3612 = vmatmul.mubr.msk.f32.vlgmr.msra.gmra.mrb[6].mxu0 %vm597_vm2, %v4900_v51  ;;  %4047 = vmatprep.subr.bf16.mxu0 %v4509_v3  ;;  %v4373_v34 = vpop.permute.xlu1 %4372 }
  0xe4   : > { %v515_v60 = vpop.permute.xlu0 %514  ;;  %3623 = vmatpush3.msk.msra.mxu1 %vm552_vm1, %v417_v15  ;;  %4049 = vmatpush3.bf16.msra.mxu0 %v4048_v29  ;;  %v4375_v61 = vunpack.i.h.bf16 %v4373_v34  ;;  %v4374_v62 = vunpack.i.l.bf16 %v4373_v34 }
  0xe5   : > { %v589_v16 = vsel %vm552_vm1, %v4370_v57, %v515_v60  ;;  %3625 = vmatmul.mubr.msk.f32.vlgmr.msra.gmra.mrb[6].mxu1 %vm597_vm2, %v4900_v51  ;;  %4050 = vmatprep.subr.bf16.mxu0 %v4509_v3 }
  0xe6   : > { %v4051_v63 = vpack.c.bf16 %v563_v59, %v589_v16  ;;  %4053 = vmatprep.subr.bf16.mxu1 %v4509_v3  ;;  %3637 = vmatprep.mubr.msk.f32.mxu0 %vm4512_vm0, %v4513_v17  ;;  %v564_v33 = vsel %vm552_vm1, %v4798_v35, %v4374_v62 }
  0xe7   : > { %4055 = vmatpush3.bf16.msra.mxu1 %v4054_v31  ;;  %3650 = vmatprep.mubr.msk.f32.mxu1 %vm4512_vm0, %v4513_v17  ;;  %v419_v8 = vpop.permute.xlu1 %418 }
  0xe8   : > { %v517_v5 = vpop.permute.xlu0 %516  ;;  %4052 = vmatpush3.bf16.msra.mxu0 %v4051_v63  ;;  %4056 = vmatprep.subr.bf16.mxu1 %v4509_v3  ;;  %v577_v10 = vsel %vm552_vm1, %v419_v8, %v4807_v37 }
  0xe9   : > { %v590_v9 = vsel %vm552_vm1, %v4375_v61, %v517_v5  ;;  %3635 = vmatprep.subr.mxu0 %v4513_v17  ;;  %v4060_v14 = vpack.c.bf16 %v577_v10, %v563_v59 }
  0xea   : > { %v4057_v11 = vpack.c.bf16 %v564_v33, %v590_v9 }
  0xeb   : > { %v4378_v35 = vpop.permute.xlu1 %4377 }
  0xec   : > { %v421_v18 = vpop.permute.xlu0 %420  ;;  %3636 = vmatpush3.msk.msra.mxu0 %vm552_vm1, %v419_v8  ;;  %4058 = vmatpush3.bf16.msra.mxu1 %v4057_v11  ;;  %v4380_v20 = vunpack.i.h.bf16 %v4378_v35  ;;  %v4379_v24 = vunpack.i.l.bf16 %v4378_v35 }
  0xed   : > { %v578_v22 = vsel %vm552_vm1, %v421_v18, %v4821_v40  ;;  %3638 = vmatmul.mubr.msk.f32.vlgmr.msra.gmra.mrb[8].mxu0 %vm597_vm2, %v4900_v51  ;;  %3648 = vmatprep.subr.mxu1 %v4513_v17 }
  0xee   : > { %v4066_v37 = vpack.c.bf16 %v578_v22, %v564_v33  ;;  %4059 = vmatprep.subr.bf16.mxu0 %v4509_v3  ;;  %3663 = vmatprep.mubr.msk.f32.mxu0 %vm4512_vm0, %v4513_v17  ;;  %v565_v19 = vsel %vm552_vm1, %v4815_v39, %v4379_v24 }
  0xef   : > { %4061 = vmatpush3.bf16.msra.mxu0 %v4060_v14  ;;  %v4383_v40 = vpop.permute.xlu1 %4382 }
  0xf0   : > { %v519_v21 = vpop.permute.xlu0 %518  ;;  %3649 = vmatpush3.msk.msra.mxu1 %vm552_vm1, %v421_v18  ;;  %4062 = vmatprep.subr.bf16.mxu0 %v4509_v3  ;;  %v4385_v30 = vunpack.i.h.bf16 %v4383_v40  ;;  %v4384_v32 = vunpack.i.l.bf16 %v4383_v40 }
  0xf1   : > { %v591_v26 = vsel %vm552_vm1, %v4380_v20, %v519_v21  ;;  %3651 = vmatmul.mubr.msk.f32.vlgmr.msra.gmra.mrb[8].mxu1 %vm597_vm2, %v4900_v51  ;;  %4065 = vmatprep.subr.bf16.mxu1 %v4509_v3 }
  0xf2   : > { %v4063_v2 = vpack.c.bf16 %v565_v19, %v591_v26  ;;  %4067 = vmatpush3.bf16.msra.mxu1 %v4066_v37  ;;  %3676 = vmatprep.mubr.msk.f32.mxu1 %vm4512_vm0, %v4513_v17  ;;  %v566_v39 = vsel %vm552_vm1, %v4824_v41, %v4384_v32 }
  0xf3   : > { %4068 = vmatprep.subr.bf16.mxu1 %v4509_v3  ;;  %v423_v6 = vpop.permute.xlu1 %422 }
  0xf4   : > { %v521_v23 = vpop.permute.xlu0 %520  ;;  %4064 = vmatpush3.bf16.msra.mxu0 %v4063_v2  ;;  %v579_v4 = vsel %vm552_vm1, %v423_v6, %v4833_v43 }
  0xf5   : > { %v592_v0 = vsel %vm552_vm1, %v4385_v30, %v521_v23  ;;  %3661 = vmatprep.subr.mxu0 %v4513_v17  ;;  %v4072_v38 = vpack.c.bf16 %v579_v4, %v565_v19 }
  0xf6   : > { %v4069_v36 = vpack.c.bf16 %v566_v39, %v592_v0 }
  0xf7   : > { %v4388_v1 = vpop.permute.xlu1 %4387 }
  0xf8   : > { %v425_v42 = vpop.permute.xlu0 %424  ;;  %3662 = vmatpush3.msk.msra.mxu0 %vm552_vm1, %v423_v6  ;;  %4070 = vmatpush3.bf16.msra.mxu1 %v4069_v36  ;;  %v4390_v44 = vunpack.i.h.bf16 %v4388_v1  ;;  %v4389_v25 = vunpack.i.l.bf16 %v4388_v1 }
  0xf9   : > { %v580_v41 = vsel %vm552_vm1, %v425_v42, %v4847_v46  ;;  %3664 = vmatmul.mubr.msk.f32.vlgmr.msra.gmra.mrb[10].mxu0 %vm597_vm2, %v4900_v51  ;;  %3674 = vmatprep.subr.mxu1 %v4513_v17 }
  0xfa   : > { %v4078_v43 = vpack.c.bf16 %v580_v41, %v566_v39  ;;  %4071 = vmatprep.subr.bf16.mxu0 %v4509_v3  ;;  %3689 = vmatprep.mubr.msk.f32.mxu0 %vm4512_vm0, %v4513_v17  ;;  %v595_v7 = vsel %vm552_vm1, %v4841_v45, %v4390_v44 }
  0xfb   : > { %4073 = vmatpush3.bf16.msra.mxu0 %v4072_v38  ;;  %v4393_v46 = vpop.permute.xlu1 %4392 }
  0xfc   : > { %v523_v28 = vpop.permute.xlu0 %522  ;;  %3675 = vmatpush3.msk.msra.mxu1 %vm552_vm1, %v425_v42  ;;  %4074 = vmatprep.subr.bf16.mxu0 %v4509_v3  ;;  %v4395_v49 = vunpack.i.h.bf16 %v4393_v46  ;;  %v4394_v50 = vunpack.i.l.bf16 %v4393_v46 }
  0xfd   : > { %v593_v48 = vsel %vm552_vm1, %v4389_v25, %v523_v28  ;;  %3677 = vmatmul.mubr.msk.f32.vlgmr.msra.gmra.mrb[10].mxu1 %vm597_vm2, %v4900_v51  ;;  %4077 = vmatprep.subr.bf16.mxu1 %v4509_v3 }
  0xfe   : > { %v4075_v27 = vpack.c.bf16 %v595_v7, %v593_v48  ;;  %4079 = vmatpush3.bf16.msra.mxu1 %v4078_v43  ;;  %3702 = vmatprep.mubr.msk.f32.mxu1 %vm4512_vm0, %v4513_v17  ;;  %v596_v45 = vsel %vm552_vm1, %v4850_v47, %v4395_v49 }
  0xff   : > { %4080 = vmatprep.subr.bf16.mxu1 %v4509_v3  ;;  %v549_v54 = vpop.permute.xlu1 %548 }
 0x100   : > { %v525_v52 = vpop.permute.xlu0 %524  ;;  %4076 = vmatpush3.bf16.msra.mxu0 %v4075_v27 }
 0x101   : > { %v594_v53 = vsel %vm552_vm1, %v4394_v50, %v525_v52  ;;  %3687 = vmatprep.subr.mxu0 %v4513_v17 }
 0x102   : > { %v4081_v55 = vpack.c.bf16 %v596_v45, %v594_v53  ;;  %v1643_v53 = vld [vmem:[%s5472_s4] sm:$0xff] }
 0x104   : > { %3688 = vmatpush3.msk.msra.mxu0 %vm552_vm1, %v549_v54  ;;  %4082 = vmatpush3.bf16.msra.mxu1 %v4081_v55  ;;  %v551_v12 = vpop.permute.xlu0 %550 }
 0x105   : > { %3690 = vmatmul.mubr.msk.f32.vlgmr.msra.gmra.mrb[12].mxu0 %vm597_vm2, %v4900_v51  ;;  %3700 = vmatprep.subr.mxu1 %v4513_v17 }
 0x106   : > { %4083 = vmatprep.subr.bf16.mxu0 %v4509_v3  ;;  %3723 = vmatprep.mubr.msk.f32.mxu0 %vm4512_vm0, %v4513_v17 }
 0x108   : > { %3701 = vmatpush3.msk.msra.mxu1 %vm552_vm1, %v551_v12 }
 0x109   : > { %3703 = vmatmul.mubr.msk.f32.vlgmr.msra.gmra.mrb[12].mxu1 %vm597_vm2, %v4900_v51  ;;  %4095 = vmatprep.subr.bf16.mxu1 %v4509_v3 }
 0x10a   : > { %3744 = vmatprep.mubr.msk.f32.mxu1 %vm4512_vm0, %v4513_v17 }
 0x110   : > { %v5066_v47 = vpop.permute.xlu1 %1611 }
 0x196   : > { %v669_v29 = vpop.f32.mrb[0].mxu0  ;;  %v741_v15 = vpop.f32.mrb[0].mxu1 }
 0x197   : > { %v5069_v56 = vadd.f32 %v5066_v47, %v669_v29  ;;  %v1615_v13 = vadd.f32 %v5066_v47, %v741_v15  ;;  %v3535_v57 = vpop.f32.mrb[1].mxu0  ;;  %v3548_v58 = vpop.f32.mrb[1].mxu1 }
 0x199   : > { %v1628_v31 = vmax.f32 %v5069_v56, 0.0  ;;  %v5073_v59 = vmax.f32 %v1615_v13, 0.0 }
 0x19b   : > { %v4402_v51 = vpack.i.bf16 %v5073_v59, %v1628_v31 }
 0x19d   : > { %4403 = vrot.lane.b32.xlu1 %v4402_v51, %s4511_s20  ;;  %4398 = vrot.lane.b32.xlu0 %v4402_v51, %s4510_s12 }
 0x1a1   : > { %v813_v60 = vpop.f32.mrb[2].mxu0  ;;  %v885_v34 = vpop.f32.mrb[2].mxu1 }
 0x1a2   : > { %v1616_v16 = vadd.f32 %v5066_v47, %v813_v60  ;;  %v3561_v61 = vpop.f32.mrb[3].mxu0  ;;  %v3574_v62 = vpop.f32.mrb[3].mxu1  ;;  %v1617_v33 = vadd.f32 %v5066_v47, %v885_v34 }
 0x1a3   : > { %v5185_v62 = vld [vmem:[%s5471_s3] sm:$0xff] }
 0x1a4   : > { %v5081_v63 = vmax.f32 %v1616_v16, 0.0  ;;  %v5088_v5 = vmax.f32 %v1617_v33, 0.0 }
 0x1a6   : > { %1696 = vrot.lane.b32.xlu1 %v5081_v63, %s4511_s20  ;;  %1660 = vrot.lane.b32.xlu0 %v5081_v63, %s4510_s12 }
 0x1aa   : > { %1698 = vrot.lane.b32.xlu1 %v5088_v5, %s4511_s20  ;;  %1662 = vrot.lane.b32.xlu0 %v5088_v5, %s4510_s12 }
 0x1ac   : > { %v957_v8 = vpop.f32.mrb[4].mxu0 }
 0x1ad   : > { %v1618_v9 = vadd.f32 %v5066_v47, %v957_v8  ;;  %v1029_v10 = vpop.f32.mrb[4].mxu1  ;;  %v3587_v11 = vpop.f32.mrb[5].mxu0 }
 0x1ae   : > { %v3600_v14 = vpop.f32.mrb[5].mxu1  ;;  %v1619_v35 = vadd.f32 %v5066_v47, %v1029_v10 }
 0x1af   : > { %v5095_v18 = vmax.f32 %v1618_v9, 0.0 }
 0x1b0   : > { %v5102_v22 = vmax.f32 %v1619_v35, 0.0 }
 0x1b1   : > { %1700 = vrot.lane.b32.xlu1 %v5095_v18, %s4511_s20  ;;  %1664 = vrot.lane.b32.xlu0 %v5095_v18, %s4510_s12 }
 0x1b5   : > { %1702 = vrot.lane.b32.xlu1 %v5102_v22, %s4511_s20  ;;  %1666 = vrot.lane.b32.xlu0 %v5102_v22, %s4510_s12 }
 0x1b6   : > { %v1101_v20 = vpop.f32.mrb[6].mxu0 }
 0x1b7   : > { %v1620_v24 = vadd.f32 %v5066_v47, %v1101_v20  ;;  %v3613_v37 = vpop.f32.mrb[7].mxu0 }
 0x1b8   : > { %v1173_v19 = vpop.f32.mrb[6].mxu1 }
 0x1b9   : > { %v5109_v21 = vmax.f32 %v1620_v24, 0.0  ;;  %v1621_v40 = vadd.f32 %v5066_v47, %v1173_v19  ;;  %v3626_v26 = vpop.f32.mrb[7].mxu1 }
 0x1bb   : > { %v5112_v30 = vmax.f32 %v1621_v40, 0.0  ;;  %1704 = vrot.lane.b32.xlu1 %v5109_v21, %s4511_s20  ;;  %1668 = vrot.lane.b32.xlu0 %v5109_v21, %s4510_s12 }
 0x1bf   : > { %1706 = vrot.lane.b32.xlu1 %v5112_v30, %s4511_s20  ;;  %1670 = vrot.lane.b32.xlu0 %v5112_v30, %s4510_s12 }
 0x1c0   : > { %v1245_v32 = vpop.f32.mrb[8].mxu0 }
 0x1c1   : > { %v1622_v2 = vadd.f32 %v5066_v47, %v1245_v32  ;;  %v3639_v39 = vpop.f32.mrb[9].mxu0 }
 0x1c3   : > { %v5123_v23 = vmax.f32 %v1622_v2, 0.0 }
 0x1c4   : > { %v1317_v6 = vpop.f32.mrb[8].mxu1 }
 0x1c5   : > { %v1623_v0 = vadd.f32 %v5066_v47, %v1317_v6  ;;  %1708 = vrot.lane.b32.xlu1 %v5123_v23, %s4511_s20  ;;  %1672 = vrot.lane.b32.xlu0 %v5123_v23, %s4510_s12  ;;  %v3652_v4 = vpop.f32.mrb[9].mxu1 }
 0x1c7   : > { %v5130_v36 = vmax.f32 %v1623_v0, 0.0 }
 0x1c9   : > { %1710 = vrot.lane.b32.xlu1 %v5130_v36, %s4511_s20  ;;  %1674 = vrot.lane.b32.xlu0 %v5130_v36, %s4510_s12 }
 0x1cc   : > { %v1389_v38 = vpop.f32.mrb[10].mxu0 }
 0x1cd   : > { %v1624_v42 = vadd.f32 %v5066_v47, %v1389_v38  ;;  %v3665_v1 = vpop.f32.mrb[11].mxu0 }
 0x1cf   : > { %v5137_v41 = vmax.f32 %v1624_v42, 0.0 }
 0x1d0   : > { %v1461_v44 = vpop.f32.mrb[10].mxu1 }
 0x1d1   : > { %v1625_v25 = vadd.f32 %v5066_v47, %v1461_v44  ;;  %1712 = vrot.lane.b32.xlu1 %v5137_v41, %s4511_s20  ;;  %1676 = vrot.lane.b32.xlu0 %v5137_v41, %s4510_s12  ;;  %v3678_v43 = vpop.f32.mrb[11].mxu1 }
 0x1d3   : > { %v5144_v7 = vmax.f32 %v1625_v25, 0.0 }
 0x1d5   : > { %1714 = vrot.lane.b32.xlu1 %v5144_v7, %s4511_s20  ;;  %1678 = vrot.lane.b32.xlu0 %v5144_v7, %s4510_s12 }
 0x1d8   : > { %v1533_v28 = vpop.f32.mrb[12].mxu0 }
 0x1d9   : > { %v1626_v46 = vadd.f32 %v5066_v47, %v1533_v28  ;;  %v3691_v48 = vpop.f32.mrb[13].mxu0 }
 0x1db   : > { %v5151_v49 = vmax.f32 %v1626_v46, 0.0 }
 0x1dc   : > { %v1605_v50 = vpop.f32.mrb[12].mxu1 }
 0x1dd   : > { %v1627_v27 = vadd.f32 %v5066_v47, %v1605_v50  ;;  %1732 = vrot.lane.b32.xlu1 %v5151_v49, %s4511_s20  ;;  %1729 = vrot.lane.b32.xlu0 %v5151_v49, %s4510_s12  ;;  %v3704_v45 = vpop.f32.mrb[13].mxu1 }
 0x1df   : > { %v5158_v52 = vmax.f32 %v1627_v27, 0.0 }
 0x1e1   : > { %1739 = vrot.lane.b32.xlu1 %v5158_v52, %s4511_s20  ;;  %1736 = vrot.lane.b32.xlu0 %v5158_v52, %s4510_s12 }
 0x1e5   : > { %2588 = vperm.xlu0 %4407, %v1643_v53  }
 0x20f   : > { %v4404_v54 = vpop.permute.xlu1 %4403  ;;  %v4399_v55 = vpop.permute.xlu0 %4398 }
 0x210   : > { %v4401_v12 = vunpack.i.h.bf16 %v4399_v55  ;;  %v4400_v47 = vunpack.i.l.bf16 %v4399_v55  ;;  %v4406_v29 = vunpack.i.h.bf16 %v4404_v54  ;;  %v4405_v13 = vunpack.i.l.bf16 %v4404_v54 }
 0x212   : > { %v4096_v15 = vpack.c.bf16 %v4401_v12, %v5073_v59  ;;  %v4084_v57 = vpack.c.bf16 %v4400_v47, %v1628_v31  ;;  %v4099_v58 = vpack.c.bf16 %v5081_v63, %v4406_v29  ;;  %v4087_v51 = vpack.c.bf16 %v5073_v59, %v4405_v13 }
 0x213   : > { %v4090_v56 = vpack.c.bf16 %v4406_v29, %v4401_v12 }
 0x214   : > { %4097 = vmatpush3.bf16.msra.mxu1 %v4096_v15  ;;  %4085 = vmatpush3.bf16.msra.mxu0 %v4084_v57 }
 0x215   : > { %4098 = vmatprep.subr.bf16.mxu1 %v4509_v3  ;;  %4086 = vmatprep.subr.bf16.mxu0 %v4509_v3 }
 0x218   : > { %v1697_v60 = vpop.permute.xlu1 %1696  ;;  %v1661_v34 = vpop.permute.xlu0 %1660  ;;  %4100 = vmatpush3.bf16.msra.mxu1 %v4099_v58  ;;  %4088 = vmatpush3.bf16.msra.mxu0 %v4087_v51 }
 0x219   : > { %4101 = vmatprep.subr.bf16.mxu1 %v4509_v3  ;;  %v4102_v16 = vpack.c.bf16 %v1697_v60, %v1661_v34  ;;  %4089 = vmatprep.subr.bf16.mxu0 %v4509_v3  ;;  %v4093_v59 = vpack.c.bf16 %v1661_v34, %v5081_v63  ;;  %v4111_v63 = vpack.c.bf16 %v5088_v5, %v1697_v60 }
 0x21c   : > { %v1663_v31 = vpop.permute.xlu0 %1662  ;;  %4103 = vmatpush3.bf16.msra.mxu1 %v4102_v16  ;;  %4091 = vmatpush3.bf16.msra.mxu0 %v4090_v56  ;;  %v1699_v33 = vpop.permute.xlu1 %1698 }
 0x21d   : > { %4104 = vmatprep.subr.bf16.mxu1 %v4509_v3  ;;  %v4105_v61 = vpack.c.bf16 %v1663_v31, %v5088_v5  ;;  %4092 = vmatprep.subr.bf16.mxu0 %v4509_v3  ;;  %v4123_v9 = vpack.c.bf16 %v5095_v18, %v1699_v33  ;;  %v4114_v11 = vpack.c.bf16 %v1699_v33, %v1663_v31 }
 0x220   : > { %4106 = vmatpush3.bf16.msra.mxu1 %v4105_v61  ;;  %4094 = vmatpush3.bf16.msra.mxu0 %v4093_v59 }
 0x221   : > { %3742 = vmatprep.subr.mxu1 %v4513_v17  ;;  %3721 = vmatprep.subr.mxu0 %v4513_v17 }
 0x223   : > { %v1665_v8 = vpop.permute.xlu0 %1664  ;;  %v1701_v10 = vpop.permute.xlu1 %1700 }
 0x224   : > { %3743 = vmatpush3.msra.mxu1 %v1699_v33  ;;  %3722 = vmatpush3.msra.mxu0 %v1697_v60  ;;  %v4126_v5 = vpack.c.bf16 %v1701_v10, %v1665_v8  ;;  %v4117_v35 = vpack.c.bf16 %v1665_v8, %v5095_v18  ;;  %v4135_v18 = vpack.c.bf16 %v5102_v22, %v1701_v10 }
 0x225   : > { %3745 = vmatmul.mubr.msk.f32.vlgmr.msra.gmra.mrb[14].mxu1 %vm1742_vm3, %v5185_v62  ;;  %3724 = vmatmul.mubr.msk.f32.vlgmr.msra.gmra.mrb[14].mxu0 %vm1742_vm3, %v5185_v62 }
 0x226   : > { %4107 = vmatprep.subr.bf16.mxu0 %v4509_v3  ;;  %4119 = vmatprep.subr.bf16.mxu1 %v4509_v3 }
 0x227   : > { %4109 = vmatpush3.bf16.msra.mxu0 %v4093_v59  ;;  %4121 = vmatpush3.bf16.msra.mxu1 %v4105_v61  ;;  %v1667_v14 = vpop.permute.xlu0 %1666  ;;  %v1703_v24 = vpop.permute.xlu1 %1702 }
 0x228   : > { %4110 = vmatprep.subr.bf16.mxu0 %v4509_v3  ;;  %4122 = vmatprep.subr.bf16.mxu1 %v4509_v3  ;;  %v4129_v20 = vpack.c.bf16 %v1667_v14, %v5102_v22  ;;  %v4147_v19 = vpack.c.bf16 %v5109_v21, %v1703_v24  ;;  %v4138_v26 = vpack.c.bf16 %v1703_v24, %v1667_v14 }
 0x229   : > { %3765 = vmatprep.mubr.msk.f32.mxu0 %vm4512_vm0, %v4513_v17  ;;  %3786 = vmatprep.mubr.msk.f32.mxu1 %vm4512_vm0, %v4513_v17 }
 0x22b   : > { %4112 = vmatpush3.bf16.msra.mxu0 %v4111_v63  ;;  %4124 = vmatpush3.bf16.msra.mxu1 %v4123_v9 }
 0x22c   : > { %4113 = vmatprep.subr.bf16.mxu0 %v4509_v3  ;;  %4125 = vmatprep.subr.bf16.mxu1 %v4509_v3 }
 0x22d   : > { %v1669_v37 = vpop.permute.xlu0 %1668  ;;  %v1705_v40 = vpop.permute.xlu1 %1704 }
 0x22e   : > { %v4150_v22 = vpack.c.bf16 %v1705_v40, %v1669_v37  ;;  %v4141_v2 = vpack.c.bf16 %v1669_v37, %v5109_v21  ;;  %v4159_v21 = vpack.c.bf16 %v5112_v30, %v1705_v40 }
 0x22f   : > { %4115 = vmatpush3.bf16.msra.mxu0 %v4114_v11  ;;  %4127 = vmatpush3.bf16.msra.mxu1 %v4126_v5 }
 0x230   : > { %4116 = vmatprep.subr.bf16.mxu0 %v4509_v3  ;;  %4128 = vmatprep.subr.bf16.mxu1 %v4509_v3 }
 0x231   : > { %v1671_v32 = vpop.permute.xlu0 %1670  ;;  %v1707_v6 = vpop.permute.xlu1 %1706 }
 0x232   : > { %v4153_v39 = vpack.c.bf16 %v1671_v32, %v5112_v30  ;;  %v4171_v4 = vpack.c.bf16 %v5123_v23, %v1707_v6  ;;  %v4162_v42 = vpack.c.bf16 %v1707_v6, %v1671_v32 }
 0x233   : > { %4118 = vmatpush3.bf16.msra.mxu0 %v4117_v35  ;;  %4130 = vmatpush3.bf16.msra.mxu1 %v4129_v20 }
 0x234   : > { %3763 = vmatprep.subr.mxu0 %v4513_v17  ;;  %3784 = vmatprep.subr.mxu1 %v4513_v17 }
 0x237   : > { %3764 = vmatpush3.msra.mxu0 %v1701_v10  ;;  %3785 = vmatpush3.msra.mxu1 %v1703_v24  ;;  %v1673_v0 = vpop.permute.xlu0 %1672  ;;  %v1709_v38 = vpop.permute.xlu1 %1708 }
 0x238   : > { %3766 = vmatmul.mubr.msk.f32.vlgmr.msra.gmra.mrb[16].mxu0 %vm1742_vm3, %v5185_v62  ;;  %3787 = vmatmul.mubr.msk.f32.vlgmr.msra.gmra.mrb[16].mxu1 %vm1742_vm3, %v5185_v62  ;;  %v4174_v30 = vpack.c.bf16 %v1709_v38, %v1673_v0  ;;  %v4165_v44 = vpack.c.bf16 %v1673_v0, %v5123_v23  ;;  %v4183_v23 = vpack.c.bf16 %v5130_v36, %v1709_v38 }
 0x239   : > { %4131 = vmatprep.subr.bf16.mxu0 %v4509_v3  ;;  %4143 = vmatprep.subr.bf16.mxu1 %v4509_v3 }
 0x23a   : > { %4133 = vmatpush3.bf16.msra.mxu0 %v4117_v35  ;;  %4145 = vmatpush3.bf16.msra.mxu1 %v4129_v20 }
 0x23b   : > { %4134 = vmatprep.subr.bf16.mxu0 %v4509_v3  ;;  %4146 = vmatprep.subr.bf16.mxu1 %v4509_v3  ;;  %v1675_v1 = vpop.permute.xlu0 %1674  ;;  %v1711_v43 = vpop.permute.xlu1 %1710 }
 0x23c   : > { %3807 = vmatprep.mubr.msk.f32.mxu0 %vm4512_vm0, %v4513_v17  ;;  %3828 = vmatprep.mubr.msk.f32.mxu1 %vm4512_vm0, %v4513_v17  ;;  %v4177_v25 = vpack.c.bf16 %v1675_v1, %v5130_v36  ;;  %v4195_v46 = vpack.c.bf16 %v5137_v41, %v1711_v43  ;;  %v4186_v50 = vpack.c.bf16 %v1711_v43, %v1675_v1 }
 0x23e   : > { %4136 = vmatpush3.bf16.msra.mxu0 %v4135_v18  ;;  %4148 = vmatpush3.bf16.msra.mxu1 %v4147_v19 }
 0x23f   : > { %4137 = vmatprep.subr.bf16.mxu0 %v4509_v3  ;;  %4149 = vmatprep.subr.bf16.mxu1 %v4509_v3 }
 0x242   : > { %4139 = vmatpush3.bf16.msra.mxu0 %v4138_v26  ;;  %4151 = vmatpush3.bf16.msra.mxu1 %v4150_v22 }
 0x243   : > { %4140 = vmatprep.subr.bf16.mxu0 %v4509_v3  ;;  %4152 = vmatprep.subr.bf16.mxu1 %v4509_v3  ;;  %v1677_v28 = vpop.permute.xlu0 %1676  ;;  %v1713_v48 = vpop.permute.xlu1 %1712 }
 0x244   : > { %v4198_v36 = vpack.c.bf16 %v1713_v48, %v1677_v28  ;;  %v4189_v45 = vpack.c.bf16 %v1677_v28, %v5137_v41  ;;  %v4207_v41 = vpack.c.bf16 %v5144_v7, %v1713_v48 }
 0x246   : > { %4142 = vmatpush3.bf16.msra.mxu0 %v4141_v2  ;;  %4154 = vmatpush3.bf16.msra.mxu1 %v4153_v39 }
 0x247   : > { %3805 = vmatprep.subr.mxu0 %v4513_v17  ;;  %3826 = vmatprep.subr.mxu1 %v4513_v17  ;;  %v1679_v27 = vpop.permute.xlu0 %1678  ;;  %v1715_v54 = vpop.permute.xlu1 %1714 }
 0x248   : > { %v4201_v53 = vpack.c.bf16 %v1679_v27, %v5144_v7  ;;  %v4219_v12 = vpack.c.bf16 %v5151_v49, %v1715_v54  ;;  %v4210_v29 = vpack.c.bf16 %v1715_v54, %v1679_v27 }
 0x24a   : > { %3806 = vmatpush3.msra.mxu0 %v1705_v40  ;;  %3827 = vmatpush3.msra.mxu1 %v1707_v6 }
 0x24b   : > { %3808 = vmatmul.mubr.msk.f32.vlgmr.msra.gmra.mrb[18].mxu0 %vm1742_vm3, %v5185_v62  ;;  %3829 = vmatmul.mubr.msk.f32.vlgmr.msra.gmra.mrb[18].mxu1 %vm1742_vm3, %v5185_v62 }
 0x24c   : > { %4155 = vmatprep.subr.bf16.mxu0 %v4509_v3  ;;  %4167 = vmatprep.subr.bf16.mxu1 %v4509_v3 }
 0x24d   : > { %4157 = vmatpush3.bf16.msra.mxu0 %v4141_v2  ;;  %4169 = vmatpush3.bf16.msra.mxu1 %v4153_v39 }
 0x24e   : > { %4158 = vmatprep.subr.bf16.mxu0 %v4509_v3  ;;  %4170 = vmatprep.subr.bf16.mxu1 %v4509_v3 }
 0x24f   : > { %3849 = vmatprep.mubr.msk.f32.mxu0 %vm4512_vm0, %v4513_v17  ;;  %3870 = vmatprep.mubr.msk.f32.mxu1 %vm4512_vm0, %v4513_v17  ;;  %v1730_v55 = vpop.permute.xlu0 %1729  ;;  %v1733_v47 = vpop.permute.xlu1 %1732 }
 0x250   : > { %v4222_v7 = vpack.c.bf16 %v1733_v47, %v1730_v55  ;;  %v4213_v13 = vpack.c.bf16 %v1730_v55, %v5151_v49  ;;  %v2664_v49 = vld [vmem:[%s5473_s5] sm:$0xff] }
 0x251   : > { %4160 = vmatpush3.bf16.msra.mxu0 %v4159_v21  ;;  %4172 = vmatpush3.bf16.msra.mxu1 %v4171_v4 }
 0x252   : > { %4161 = vmatprep.subr.bf16.mxu0 %v4509_v3  ;;  %4173 = vmatprep.subr.bf16.mxu1 %v4509_v3 }
 0x253   : > { %v1737_v15 = vpop.permute.xlu0 %1736  ;;  %v1740_v58 = vpop.permute.xlu1 %1739 }
 0x254   : > { %v4225_v57 = vpack.c.bf16 %v1737_v15, %v5158_v52  ;;  %v2665_v52 = vld [vmem:[%s5473_s5 + $0x8] sm:$0x7] }
 0x255   : > { %4163 = vmatpush3.bf16.msra.mxu0 %v4162_v42  ;;  %4175 = vmatpush3.bf16.msra.mxu1 %v4174_v30  ;;  %v5313_v51 = vpack.c.bf16 %v2665_v52, %v2664_v49 }
 0x256   : > { %4164 = vmatprep.subr.bf16.mxu0 %v4509_v3  ;;  %4176 = vmatprep.subr.bf16.mxu1 %v4509_v3 }
 0x259   : > { %4166 = vmatpush3.bf16.msra.mxu0 %v4165_v44  ;;  %4178 = vmatpush3.bf16.msra.mxu1 %v4177_v25 }
 0x25a   : > { %3847 = vmatprep.subr.mxu0 %v4513_v17  ;;  %3868 = vmatprep.subr.mxu1 %v4513_v17 }
 0x25d   : > { %3848 = vmatpush3.msra.mxu0 %v1709_v38  ;;  %3869 = vmatpush3.msra.mxu1 %v1711_v43 }
 0x25e   : > { %3850 = vmatmul.mubr.msk.f32.vlgmr.msra.gmra.mrb[20].mxu0 %vm1742_vm3, %v5185_v62  ;;  %3871 = vmatmul.mubr.msk.f32.vlgmr.msra.gmra.mrb[20].mxu1 %vm1742_vm3, %v5185_v62 }
 0x25f   : > { %4179 = vmatprep.subr.bf16.mxu0 %v4509_v3  ;;  %4191 = vmatprep.subr.bf16.mxu1 %v4509_v3 }
 0x260   : > { %4181 = vmatpush3.bf16.msra.mxu0 %v4165_v44  ;;  %4193 = vmatpush3.bf16.msra.mxu1 %v4177_v25 }
 0x261   : > { %4182 = vmatprep.subr.bf16.mxu0 %v4509_v3  ;;  %4194 = vmatprep.subr.bf16.mxu1 %v4509_v3 }
 0x262   : > { %3891 = vmatprep.mubr.msk.f32.mxu0 %vm4512_vm0, %v4513_v17  ;;  %3912 = vmatprep.mubr.msk.f32.mxu1 %vm4512_vm0, %v4513_v17 }
 0x264   : > { %4184 = vmatpush3.bf16.msra.mxu0 %v4183_v23  ;;  %4196 = vmatpush3.bf16.msra.mxu1 %v4195_v46  ;;  %v5327_v34 = vpop.permute.xlu0 %2588 }
 0x265   : > { %4185 = vmatprep.subr.bf16.mxu0 %v4509_v3  ;;  %4197 = vmatprep.subr.bf16.mxu1 %v4509_v3 }
 0x268   : > { %4187 = vmatpush3.bf16.msra.mxu0 %v4186_v50  ;;  %4199 = vmatpush3.bf16.msra.mxu1 %v4198_v36 }
 0x269   : > { %4188 = vmatprep.subr.bf16.mxu0 %v4509_v3  ;;  %4200 = vmatprep.subr.bf16.mxu1 %v4509_v3 }
 0x26c   : > { %4190 = vmatpush3.bf16.msra.mxu0 %v4189_v45  ;;  %4202 = vmatpush3.bf16.msra.mxu1 %v4201_v53 }
 0x26d   : > { %3889 = vmatprep.subr.mxu0 %v4513_v17  ;;  %3910 = vmatprep.subr.mxu1 %v4513_v17 }
 0x270   : > { %3890 = vmatpush3.msra.mxu0 %v1713_v48  ;;  %3911 = vmatpush3.msra.mxu1 %v1715_v54 }
 0x271   : > { %3892 = vmatmul.mubr.msk.f32.vlgmr.msra.gmra.mrb[22].mxu0 %vm1742_vm3, %v5185_v62  ;;  %3913 = vmatmul.mubr.msk.f32.vlgmr.msra.gmra.mrb[22].mxu1 %vm1742_vm3, %v5185_v62 }
 0x272   : > { %4203 = vmatprep.subr.bf16.mxu0 %v4509_v3  ;;  %4215 = vmatprep.subr.bf16.mxu1 %v4509_v3 }
 0x273   : > { %4205 = vmatpush3.bf16.msra.mxu0 %v4189_v45  ;;  %4217 = vmatpush3.bf16.msra.mxu1 %v4201_v53 }
 0x274   : > { %4206 = vmatprep.subr.bf16.mxu0 %v4509_v3  ;;  %4218 = vmatprep.subr.bf16.mxu1 %v4509_v3 }
 0x275   : > { %3933 = vmatprep.mubr.msk.f32.mxu0 %vm4512_vm0, %v4513_v17  ;;  %3954 = vmatprep.mubr.msk.f32.mxu1 %vm4512_vm0, %v4513_v17 }
 0x277   : > { %4208 = vmatpush3.bf16.msra.mxu0 %v4207_v41  ;;  %4220 = vmatpush3.bf16.msra.mxu1 %v4219_v12 }
 0x278   : > { %4209 = vmatprep.subr.bf16.mxu0 %v4509_v3  ;;  %4221 = vmatprep.subr.bf16.mxu1 %v4509_v3 }
 0x27b   : > { %4211 = vmatpush3.bf16.msra.mxu0 %v4210_v29  ;;  %4223 = vmatpush3.bf16.msra.mxu1 %v4222_v7 }
 0x27c   : > { %4212 = vmatprep.subr.bf16.mxu0 %v4509_v3  ;;  %4224 = vmatprep.subr.bf16.mxu1 %v4509_v3 }
 0x27f   : > { %4214 = vmatpush3.bf16.msra.mxu0 %v4213_v13  ;;  %4226 = vmatpush3.bf16.msra.mxu1 %v4225_v57 }
 0x280   : > { %3931 = vmatprep.subr.mxu0 %v4513_v17  ;;  %3952 = vmatprep.subr.mxu1 %v4513_v17 }
 0x283   : > { %3932 = vmatpush3.msra.mxu0 %v1733_v47  ;;  %3953 = vmatpush3.msra.mxu1 %v1740_v58 }
 0x284   : > { %3934 = vmatmul.mubr.msk.f32.vlgmr.msra.gmra.mrb[24].mxu0 %vm1742_vm3, %v5185_v62  ;;  %3955 = vmatmul.mubr.msk.f32.vlgmr.msra.gmra.mrb[24].mxu1 %vm1742_vm3, %v5185_v62 }
 0x285   : > { %4227 = vmatprep.subr.bf16.mxu0 %v4509_v3  ;;  %3961 = vmatprep.mubr.msk.f32.mxu0 %vm4512_vm0, %v4513_v17 }
 0x286   : > { %4231 = vmatprep.subr.bf16.mxu1 %v4509_v3  ;;  %3968 = vmatprep.mubr.msk.f32.mxu1 %vm4512_vm0, %v4513_v17 }
 0x287   : > { %4230 = vmatpush3.bf16.msk.msra.mxu0 %vm5315_vm6, %v5313_v51  ;;  %4234 = vmatpush3.bf16.msk.msra.mxu1 %vm5315_vm6, %v5313_v51 }
 0x288   : > { %4235 = vmatprep.subr.bf16.mxu0 %v4509_v3  ;;  %4239 = vmatprep.subr.bf16.mxu1 %v4509_v3 }
 0x2f8   : > { %v1882_v16 = vpop.f32.mrb[14].mxu1  ;;  %v1812_v56 = vpop.f32.mrb[14].mxu0 }
 0x2f9   : > { %v2592_v31 = vadd.f32 %v5327_v34, %v1882_v16  ;;  %v3746_v61 = vpop.f32.mrb[15].mxu1  ;;  %v2591_v59 = vadd.f32 %v5327_v34, %v1812_v56  ;;  %v3725_v62 = vpop.f32.mrb[15].mxu0 }
 0x2fb   : > { %v2604_v33 = vmax.f32 %v2592_v31, 0.0  ;;  %v2603_v63 = vmax.f32 %v2591_v59, 0.0 }
 0x2fd   : > { %2617 = vst.msk [vmem:[%s5332_s23 + $0x8] sm:$0xff] %vm2615_vm7, %v2604_v33  ;;  %2616 = vst.msk [vmem:[%s5332_s23] sm:$0xff] %vm2615_vm7, %v2603_v63  ;;  %v5338_v8 = vmax.f32 %v2603_v63, %v2604_v33 }
 0x2ff   : > { %2640 = vrot.lane.b32.xlu1 %v5338_v8, %s4510_s12 }
 0x30b   : > { %v1952_v9 = vpop.f32.mrb[16].mxu0  ;;  %v2022_v11 = vpop.f32.mrb[16].mxu1 }
 0x30c   : > { %v2593_v10 = vadd.f32 %v5327_v34, %v1952_v9  ;;  %v3767_v5 = vpop.f32.mrb[17].mxu0  ;;  %v2594_v14 = vadd.f32 %v5327_v34, %v2022_v11  ;;  %v3788_v35 = vpop.f32.mrb[17].mxu1 }
 0x30e   : > { %v2605_v20 = vmax.f32 %v2593_v10, 0.0  ;;  %v2606_v24 = vmax.f32 %v2594_v14, 0.0 }
 0x310   : > { %2618 = vst.msk [vmem:[%s5332_s23 + $0x10] sm:$0xff] %vm2615_vm7, %v2605_v20  ;;  %2619 = vst.msk [vmem:[%s5332_s23 + $0x18] sm:$0xff] %vm2615_vm7, %v2606_v24  ;;  %v2629_v18 = vmax.f32 %v2605_v20, %v2606_v24 }
 0x312   : > { %2642 = vrot.lane.b32.xlu1 %v2629_v18, %s4510_s12 }
 0x31e   : > { %v2092_v37 = vpop.f32.mrb[18].mxu0  ;;  %v2162_v40 = vpop.f32.mrb[18].mxu1 }
 0x31f   : > { %v2595_v19 = vadd.f32 %v5327_v34, %v2092_v37  ;;  %v3809_v26 = vpop.f32.mrb[19].mxu0  ;;  %v2596_v22 = vadd.f32 %v5327_v34, %v2162_v40  ;;  %v3830_v32 = vpop.f32.mrb[19].mxu1 }
 0x321   : > { %v2607_v2 = vmax.f32 %v2595_v19, 0.0  ;;  %v2608_v39 = vmax.f32 %v2596_v22, 0.0 }
 0x323   : > { %2620 = vst.msk [vmem:[%s5332_s23 + $0x20] sm:$0xff] %vm2615_vm7, %v2607_v2  ;;  %2621 = vst.msk [vmem:[%s5332_s23 + $0x28] sm:$0xff] %vm2615_vm7, %v2608_v39  ;;  %v2630_v6 = vmax.f32 %v2607_v2, %v2608_v39 }
 0x325   : > { %2644 = vrot.lane.b32.xlu0 %v2630_v6, %s4510_s12 }
 0x331   : > { %v2232_v21 = vpop.f32.mrb[20].mxu0  ;;  %v2302_v4 = vpop.f32.mrb[20].mxu1 }
 0x332   : > { %v2597_v0 = vadd.f32 %v5327_v34, %v2232_v21  ;;  %v3851_v38 = vpop.f32.mrb[21].mxu0  ;;  %v2598_v42 = vadd.f32 %v5327_v34, %v2302_v4  ;;  %v3872_v30 = vpop.f32.mrb[21].mxu1 }
 0x334   : > { %v2609_v1 = vmax.f32 %v2597_v0, 0.0  ;;  %v2610_v44 = vmax.f32 %v2598_v42, 0.0 }
 0x336   : > { %2622 = vst.msk [vmem:[%s5332_s23 + $0x30] sm:$0xff] %vm2615_vm7, %v2609_v1  ;;  %2623 = vst.msk [vmem:[%s5332_s23 + $0x38] sm:$0xff] %vm2615_vm7, %v2610_v44  ;;  %v2631_v25 = vmax.f32 %v2609_v1, %v2610_v44 }
 0x338   : > { %2646 = vrot.lane.b32.xlu1 %v2631_v25, %s4510_s12 }
 0x344   : > { %v2372_v43 = vpop.f32.mrb[22].mxu0  ;;  %v2442_v28 = vpop.f32.mrb[22].mxu1 }
 0x345   : > { %v2599_v23 = vadd.f32 %v5327_v34, %v2372_v43  ;;  %v3893_v46 = vpop.f32.mrb[23].mxu0  ;;  %v2600_v48 = vadd.f32 %v5327_v34, %v2442_v28  ;;  %v3914_v50 = vpop.f32.mrb[23].mxu1 }
 0x347   : > { %v2611_v36 = vmax.f32 %v2599_v23, 0.0  ;;  %v2612_v27 = vmax.f32 %v2600_v48, 0.0 }
 0x349   : > { %2624 = vst.msk [vmem:[%s5332_s23 + $0x40] sm:$0xff] %vm2615_vm7, %v2611_v36  ;;  %2625 = vst.msk [vmem:[%s5332_s23 + $0x48] sm:$0xff] %vm2615_vm7, %v2612_v27  ;;  %v2632_v45 = vmax.f32 %v2611_v36, %v2612_v27 }
 0x34b   : > { %2648 = vrot.lane.b32.xlu0 %v2632_v45, %s4510_s12 }
 0x357   : > { %v2512_v53 = vpop.f32.mrb[24].mxu0  ;;  %v2582_v41 = vpop.f32.mrb[24].mxu1 }
 0x358   : > { %v2601_v54 = vadd.f32 %v5327_v34, %v2512_v53  ;;  %v3935_v55 = vpop.f32.mrb[25].mxu0  ;;  %v2602_v12 = vadd.f32 %v5327_v34, %v2582_v41  ;;  %v3956_v47 = vpop.f32.mrb[25].mxu1 }
 0x35a   : > { %v2613_v29 = vmax.f32 %v2601_v54, 0.0  ;;  %v2614_v7 = vmax.f32 %v2602_v12, 0.0 }
 0x35c   : > { %2626 = vst.msk [vmem:[%s5332_s23 + $0x50] sm:$0xff] %vm2615_vm7, %v2613_v29  ;;  %2627 = vst.msk [vmem:[%s5332_s23 + $0x58] sm:$0xff] %vm2615_vm7, %v2614_v7  ;;  %v2633_v15 = vmax.f32 %v2613_v29, %v2614_v7 }
 0x35e   : > { %2650 = vrot.lane.b32.xlu1 %v2633_v15, %s4510_s12  ;;  %s4253_s12 = smul.u32 1536, %s4580_s28 }
 0x360   : > { %s5411_s9 = scalar_lea.hbm %s5475_s7, %s4253_s12 }
 0x371   : > { %v2641_v13 = vpop.permute.xlu1 %2640 }
 0x372   : > { %v2658_v57 = vmax.f32 %v5338_v8, %v2641_v13 }
 0x374   : > { %3962 = vmatmul.mubr.msk.f32.vlgmr.msra.gmra.mrb[26].mxu0 %vm2666_vm8, %v2658_v57 }
 0x375   : > { %4238 = vmatpush3.bf16.msk.msra.mxu0 %vm5315_vm6, %v5313_v51  ;;  %3975 = vmatprep.mubr.msk.f32.mxu0 %vm4512_vm0, %v4513_v17 }
 0x376   : > { %4243 = vmatprep.subr.bf16.mxu0 %v4509_v3 }
 0x384   : > { %v2643_v58 = vpop.permute.xlu1 %2642 }
 0x385   : > { %v2659_v49 = vmax.f32 %v2629_v18, %v2643_v58 }
 0x387   : > { %3969 = vmatmul.mubr.msk.f32.vlgmr.msra.gmra.mrb[26].mxu1 %vm2666_vm8, %v2659_v49 }
 0x388   : > { %4242 = vmatpush3.bf16.msk.msra.mxu1 %vm5315_vm6, %v5313_v51  ;;  %3982 = vmatprep.mubr.msk.f32.mxu1 %vm4512_vm0, %v4513_v17 }
 0x389   : > { %4247 = vmatprep.subr.bf16.mxu1 %v4509_v3 }
 0x397   : > { %v2645_v52 = vpop.permute.xlu0 %2644 }
 0x398   : > { %v2660_v34 = vmax.f32 %v2630_v6, %v2645_v52 }
 0x39a   : > { %3976 = vmatmul.mubr.msk.f32.vlgmr.msra.gmra.mrb[28].mxu0 %vm2666_vm8, %v2660_v34 }
 0x39b   : > { %4246 = vmatpush3.bf16.msk.msra.mxu0 %vm5315_vm6, %v5313_v51  ;;  %3989 = vmatprep.mubr.msk.f32.mxu0 %vm4512_vm0, %v4513_v17 }
 0x3aa   : > { %v2647_v16 = vpop.permute.xlu1 %2646 }
 0x3ab   : > { %v2661_v56 = vmax.f32 %v2631_v25, %v2647_v16 }
 0x3ad   : > { %3983 = vmatmul.mubr.msk.f32.vlgmr.msra.gmra.mrb[28].mxu1 %vm2666_vm8, %v2661_v56 }
 0x3ae   : > { %4250 = vmatpush3.bf16.msk.msra.mxu1 %vm5315_vm6, %v5313_v51  ;;  %3996 = vmatprep.mubr.msk.f32.mxu1 %vm4512_vm0, %v4513_v17 }
 0x3bd   : > { %v2649_v3 = vpop.permute.xlu0 %2648 }
 0x3be   : > { %v2662_v31 = vmax.f32 %v2632_v45, %v2649_v3 }
 0x3c0   : > { %3990 = vmatmul.mubr.msk.f32.vlgmr.msra.gmra.mrb[30].mxu0 %vm2666_vm8, %v2662_v31 }
 0x3d0   : > { %v2651_v61 = vpop.permute.xlu1 %2650 }
 0x3d1   : > { %v2663_v59 = vmax.f32 %v2633_v15, %v2651_v61 }
 0x3d3   : > { %3997 = vmatmul.mubr.msk.f32.vlgmr.msra.gmra.mrb[30].mxu1 %vm2666_vm8, %v2663_v59 }
 0x3d4   : > { %4451 = shalt.err (!%p4448_p2)
}
 0x3d5   : > { %s4452_s20 = scalar_lea.hbm %s5411_s9, 1536  ;;  %s4456_s12 = scalar_lea.hbm %s5475_s7, 3072 }
 0x3d6   : > { %p4453_p4 = scmp.ne.s32.totalorder %s5411_s9, %s4452_s20  ;;  %p4457_p9 = scmp.lt.u32.totalorder %s5411_s9, %s5475_s7 }
 0x3d7   : > { %p4458_p1 = scmp.lt.u32.totalorder %s4456_s12, %s4452_s20  ;;  %p4460_p6 = scmp.lt.u32.totalorder %s4452_s20, %s5411_s9 }
 0x3d8   : > { %p4454_p5 = pnand %p4453_p4, %p5484_p11 }
 0x3d9   : > { %p4459_p3 = por %p4458_p1, %p4457_p9 }
 0x3da   : > { %p4455_p7 = pneg %p4454_p5 }
 0x3db   : > { %p4461_p12 = por %p4460_p6, %p4459_p3 }
 0x3dd   : > { %p4462_p13 = pnand %p4461_p12, %p4455_p7 }
 0x3df   : > { %4465 = shalt.err (!%p4462_p13)
}
 0x3e0   : > { %s4517_s11 = smov 128   ;;  %s4518_s17 = smov 8   ;;  %vm3109_vm9 = vcmask 48128  }
 0x3e1   : > { %4256 = dma.vmem_to_hbm [thread:$0]  (%p5484_p11), %s5413_s29, 1536, %s5411_s9, %s3122_s8, %s4517_s11, %s4517_s11, %s4518_s17  }
 0x3e2   : > { %p305_p8 = scmp.lt.s32.totalorder %s4580_s28, 1 }
 0x3e4   : > { %s5492_s28 = smov (!%p305_p8, %s4580_s28), 1 }
 0x3e5   : > { %s4252_s18 = smul.u32 48, %s5492_s28 }
 0x3e7   : > { %s309_s20 = scalar_lea.vmem %s5474_s6, %s4252_s18 }
 0x447   : > { %v2740_v17 = vpop.f32.mrb[26].mxu0 }
 0x448   : > { %3110 = vst.msk [vmem:[%s309_s20] sm:$0xff] %vm3109_vm9, %v2740_v17  ;;  %v3963_v51 = vpop.f32.mrb[27].mxu0 }
 0x45a   : > { %v2813_v60 = vpop.f32.mrb[26].mxu1 }
 0x45b   : > { %3111 = vst.msk [vmem:[%s309_s20 + $0x8] sm:$0xff] %vm3109_vm9, %v2813_v60  ;;  %v3970_v62 = vpop.f32.mrb[27].mxu1 }
 0x46d   : > { %v2886_v33 = vpop.f32.mrb[28].mxu0 }
 0x46e   : > { %3112 = vst.msk [vmem:[%s309_s20 + $0x10] sm:$0xff] %vm3109_vm9, %v2886_v33  ;;  %v3977_v63 = vpop.f32.mrb[29].mxu0 }
 0x480   : > { %v2959_v8 = vpop.f32.mrb[28].mxu1 }
 0x481   : > { %3113 = vst.msk [vmem:[%s309_s20 + $0x18] sm:$0xff] %vm3109_vm9, %v2959_v8  ;;  %v3984_v9 = vpop.f32.mrb[29].mxu1 }
 0x493   : > { %v3032_v10 = vpop.f32.mrb[30].mxu0 }
 0x494   : > { %3114 = vst.msk [vmem:[%s309_s20 + $0x20] sm:$0xff] %vm3109_vm9, %v3032_v10  ;;  %v3991_v11 = vpop.f32.mrb[31].mxu0 }
 0x4a6   : > { %v3105_v5 = vpop.f32.mrb[30].mxu1 }
 0x4a7   : > { %3115 = vst.msk [vmem:[%s309_s20 + $0x28] sm:$0xff] %vm3109_vm9, %v3105_v5  ;;  %v3998_v14 = vpop.f32.mrb[31].mxu1 }
 0x4a8 PF: > { %s3161_s28 = sand.u32 1, %s4492_s24   ;;  %p5485_p11 = scmp.ne.s32.totalorder %s5480_s14, 0 }
 0x4a9   : > { %p5486_p10 = scmp.ge.s32.totalorder %s4504_s27, 2  ;;  %s3162_s13 = scalar_lea.sflag [#allocation4], %s3161_s28 }
 0x4ab   : > { %p4263_p0 = pnand %p5486_p10, %p5485_p11 }
 0x4ad   : > { %4487 = dma.done.wait (!%p4263_p0), %s3162_s13, 1536  }
 0x4ae   : > { %4489 = vsyncadd (!%p4263_p0), %s3162_s13, 4294965760  ;;  %p21_p2 = scmp.ge.s32.totalorder %s4584_s30, 4   ;;  %s5487_s24 = smov %s4496_s25 }
 0x4af   : > { %s5488_s25 = smov %s4500_s26  ;;  %s5489_s26 = smov %s4596_s10 }
 0x4b0   : > { %s5490_s27 = smov %s4584_s30  ;;  %23 = sbr.rel (!%p21_p2) target bundleno = 5 (0x5), region = 101 }
 0x4b7   :  { %3167 = vsyncpa [#allocation3], 1 }
 0x4b8   :  { %3169 = vsyncpa [#allocation3 + $0x1], 1 }
 0x4b9   :  { %3170 = vsyncpa [#allocation4], 1 }
 0x4ba   :  { %3172 = vsyncpa [#allocation4 + $0x1], 1 }

</bundles_post_ra>
